<compile_context>
chip_gen: v7x
topology: tpu7x:2x2x1
jax: 0.10.0
libtpu: 0.0.40
codegen_flags: <defaults>
</compile_context>

<pallas_src>
import jax
import jax.numpy as jnp
from jax import lax
from jax.experimental import pallas as pl
from jax.experimental.pallas import tpu as pltpu

C1 = 128   # out channels of conv1
C2 = 256   # out channels of conv2
EPS = 1e-5


def _round_up(x, m):
    return (x + m - 1) // m * m


def conv_block_kernel(xcol_ref, w1_ref, w2_ref, t1_ref, t2_ref, o_ref):
    """One batch tile of the fused ConvBlock forward (all compute in VMEM).

    xcol_ref : (NB, Pr, 8)   im2col'd input: cols 0..4 = xpad[2p .. 2p+4], rest 0
    w1_ref   : (8, 3*C1)     conv1 weights for streams A(pos 2p)/B(2p+1)/C(2p+2),
                             BN1 scale pre-folded (matmul dtype)
    w2_ref   : (2*C1, C2)    conv2 taps stacked along K, BN2 scale pre-folded
    t1_ref   : (1, 3*C1)     conv1 bias + BN1 shift, tiled for the 3 streams (f32)
    t2_ref   : (1, C2)       conv2 bias + BN2 shift (f32)
    o_ref    : (NB, C2, P)   pooled output, channel-major (PyTorch flatten order)
    """
    NB, Pr, K = xcol_ref.shape
    c3 = w1_ref.shape[1]
    c1 = c3 // 3
    c2 = w2_ref.shape[1]
    P = o_ref.shape[2]
    cdt = w2_ref.dtype                      # matmul feed dtype (bf16 or f32)

    # ---- conv1 at positions 2p, 2p+1, 2p+2 as ONE small-K MXU matmul --------
    xc = xcol_ref[...].reshape(NB * Pr, K)              # free: Pr % 8 == 0
    g = jnp.dot(xc, w1_ref[...], preferred_element_type=jnp.float32)  # (M, 3*C1)
    g = jnp.maximum(g + t1_ref[...], 0.0).astype(cdt)  # bias+ReLU, cast for MXU

    # ---- conv2 (k=2): even/odd output rows via two K=2*C1 matmuls.
    #      The fused-tap LHS [A|B] / [B|C] are overlapping, lane-aligned slices
    #      of g -> no concat / copy is ever built (v5e-friendly too).
    h2e = jnp.dot(g[:, 0:2 * c1], w2_ref[...], preferred_element_type=jnp.float32)
    h2o = jnp.dot(g[:, c1:3 * c1], w2_ref[...], preferred_element_type=jnp.float32)

    # ---- bias + ReLU + AvgPool1d(2): pool is a pure elementwise add ---------
    a2e = jnp.maximum(h2e + t2_ref[...], 0.0)
    a2o = jnp.maximum(h2o + t2_ref[...], 0.0)
    pooled = (0.5 * (a2e + a2o)).reshape(NB, Pr, c2)    # free: Pr % 8 == 0

    # ---- store channel-major (PyTorch flatten order): per-row 2-D XLU
    #      transpose of the *smallest* tensor; XLU has slack here.
    for b in range(NB):                                 # NB is small & static
        o_ref[b, :, :] = pooled[b].T[:, :P].astype(o_ref.dtype)


def init_params(key):
    k1, k2, k3, k4 = jax.random.split(key, 4)
    return dict(
        W1=jax.random.normal(k1, (C1, 1, 3), jnp.float32) * 0.1,
        b1=jax.random.normal(k2, (C1,), jnp.float32) * 0.1,
        W2=jax.random.normal(k3, (C2, C1, 2), jnp.float32) * 0.05,
        b2=jax.random.normal(k4, (C2,), jnp.float32) * 0.05,
        bn1=dict(gamma=jnp.ones(C1), beta=jnp.zeros(C1),
                 mean=jnp.zeros(C1), var=jnp.ones(C1)),
        bn2=dict(gamma=jnp.ones(C2), beta=jnp.zeros(C2),
                 mean=jnp.zeros(C2), var=jnp.ones(C2)),
    )


def conv_block_forward(x, p, *, batch_tile=None,
                       matmul_dtype=jnp.bfloat16, out_dtype=jnp.float32):
    """x: (N, 1, L) float32 (PyTorch NCL). Returns (N, C2 * ((L-1)//2)).

    matmul_dtype: bf16 by default (2-4x MXU rate on v5e/v6e/v7x, f32 accumulate);
                  pass jnp.float32 for exact eval-mode parity (<=1e-4).
    out_dtype:    pass jnp.bfloat16 to halve output HBM writeback (the roofline
                  term on v5e/v6e) if the consumer tolerates it.
    """
    N, cin, L = x.shape
    assert cin == 1
    assert L >= 3, "ConvBlock needs L >= 3 (output would otherwise be empty)"
    P = (L - 1) // 2
    Pr = _round_up(P, 8)                     # padded rows -> 8-aligned reshapes

    # ---- batch tiling: pad N (never a silent whole-batch fallback), keep the
    #      grid >= 2 steps when possible so both v7x TensorCores get work. ----
    if batch_tile is None:
        # size the tile to ~24 MiB of per-tile live data (fits 32 MiB default
        # scoped VMEM and v7x's 64 MiB physical with headroom)
        per_row = (6 * 4 + 2 * jnp.dtype(out_dtype).itemsize) * Pr * C2
        batch_tile = max(8, min(64, (24 * 1024 * 1024) // per_row) // 8 * 8)
    NB = max(8, 8 * (int(batch_tile) // 8))
    if N <= NB:
        NB = max(8, 8 * ((N + 15) // 16))    # aim for ~2 grid steps
    Np = _round_up(N, NB)
    grid = (Np // NB,)

    # ---- constant folding: BN scales into conv weights, biases into shifts --
    s1 = p["bn1"]["gamma"] * lax.rsqrt(p["bn1"]["var"] + EPS)
    t1 = p["bn1"]["beta"] + (p["b1"] - p["bn1"]["mean"]) * s1
    s2 = p["bn2"]["gamma"] * lax.rsqrt(p["bn2"]["var"] + EPS)
    t2 = p["bn2"]["beta"] + (p["b2"] - p["bn2"]["mean"]) * s2

    w1f = jnp.transpose(p["W1"][:, 0, :]) * s1[None, :]            # (3, C1)
    # conv1 "streams" A/B/C = conv1 at positions 2p / 2p+1 / 2p+2, all computed
    # from the SAME 5-tap im2col row; stack their weights along the lane axis.
    wstack = jnp.zeros((8, 3 * C1), jnp.float32)
    wstack = wstack.at[0:3, 0 * C1:1 * C1].set(w1f)
    wstack = wstack.at[1:4, 1 * C1:2 * C1].set(w1f)
    wstack = wstack.at[2:5, 2 * C1:3 * C1].set(w1f)
    w2cat = jnp.concatenate([jnp.transpose(p["W2"][:, :, 0]),
                             jnp.transpose(p["W2"][:, :, 1])], axis=0)  # (2*C1, C2)
    w2cat = w2cat * s2[None, :]

    wstack = wstack.astype(matmul_dtype)
    w2cat = w2cat.astype(matmul_dtype)
    t1_3 = jnp.tile(t1, 3).reshape(1, 3 * C1).astype(jnp.float32)
    t2r = t2.reshape(1, C2).astype(jnp.float32)

    # ---- wrapper-side im2col: 5 taps xpad[2p .. 2p+4] per pooled row --------
    xpad = jnp.pad(x[:, 0, :], ((0, 0), (1, 1)))                    # (N, L+2)
    cols = [xpad[:, j:j + 2 * P:2] for j in range(5)]               # each (N, P)
    xcol = jnp.stack(cols, axis=-1)                                 # (N, P, 5)
    xcol = jnp.pad(xcol, ((0, Np - N), (0, Pr - P), (0, 3)))        # (Np, Pr, 8)
    xcol = xcol.astype(matmul_dtype)

    m_rows = Np * Pr
    flops = 2 * m_rows * (2 * C1) * C2 * 2 + 2 * m_rows * 8 * (3 * C1)
    bytes_accessed = (xcol.size * xcol.dtype.itemsize
                      + (wstack.size + w2cat.size) * wstack.dtype.itemsize
                      + (t1_3.size + t2r.size) * 4
                      + Np * C2 * P * jnp.dtype(out_dtype).itemsize)

    out_cm = pl.pallas_call(
        conv_block_kernel,
        out_shape=jax.ShapeDtypeStruct((Np, C2, P), out_dtype),
        grid=grid,
        in_specs=[
            pl.BlockSpec((NB, Pr, 8), lambda i: (i, 0, 0)),     # input tile
            pl.BlockSpec((8, 3 * C1), lambda i: (0, 0)),        # conv1 w (resident)
            pl.BlockSpec((2 * C1, C2), lambda i: (0, 0)),       # conv2 w (resident)
            pl.BlockSpec((1, 3 * C1), lambda i: (0, 0)),        # t1
            pl.BlockSpec((1, C2), lambda i: (0, 0)),            # t2
        ],
        out_specs=pl.BlockSpec((NB, C2, P), lambda i: (i, 0, 0)),
        compiler_params=pltpu.CompilerParams(
            dimension_semantics=("parallel",),                  # v7x: 2 TCs split batch
            vmem_limit_bytes=64 * 1024 * 1024),
        cost_estimate=pl.CostEstimate(
            flops=int(flops), transcendentals=0,
            bytes_accessed=int(bytes_accessed)),
    )(xcol, wstack, w2cat, t1_3, t2r)

    if Np != N:
        out_cm = out_cm[:N]
    # (N, C2, P) is already PyTorch channel-major order -> flatten is free.
    return out_cm.reshape(N, C2 * P)


def reference_forward(x, p):
    """Pure-JAX reference (lax.conv) matching PyTorch eval-mode semantics."""
    dn = ("NCH", "OIH", "NCH")
    y = lax.conv_general_dilated(x, p["W1"], (1,), ((1, 1),), dimension_numbers=dn)
    y = y + p["b1"][None, :, None]
    y = (y - p["bn1"]["mean"][None, :, None]) / jnp.sqrt(p["bn1"]["var"][None, :, None] + EPS)
    y = y * p["bn1"]["gamma"][None, :, None] + p["bn1"]["beta"][None, :, None]
    y = jnp.maximum(y, 0.0)
    y = lax.conv_general_dilated(y, p["W2"], (1,), ((0, 0),), dimension_numbers=dn)
    y = y + p["b2"][None, :, None]
    y = (y - p["bn2"]["mean"][None, :, None]) / jnp.sqrt(p["bn2"]["var"][None, :, None] + EPS)
    y = y * p["bn2"]["gamma"][None, :, None] + p["bn2"]["beta"][None, :, None]
    y = jnp.maximum(y, 0.0)
    N, C, L2 = y.shape
    P = L2 // 2
    y = y[:, :, :2 * P].reshape(N, C, P, 2).mean(-1)
    return y.reshape(N, C * P)


if __name__ == "__main__":
    key = jax.random.PRNGKey(0)
    kx, kp = jax.random.split(key)
    N, L = 16, 16                  # small; NB=8 -> grid of 2 steps
    x = jax.random.normal(kx, (N, 1, L), jnp.float32)
    params = init_params(kp)
    P = (L - 1) // 2

    ref = reference_forward(x, params)

    # exact-parity path (f32 matmul feed)
    out_f32 = jax.block_until_ready(
        conv_block_forward(x, params, matmul_dtype=jnp.float32))
    assert out_f32.shape == (N, C2 * P), out_f32.shape
    assert jnp.allclose(out_f32, ref, rtol=1e-4, atol=1e-4), \
        float(jnp.max(jnp.abs(out_f32 - ref)))

    # default fast path (bf16 matmul operands, f32 accumulation) — looser tol
    out_bf16 = jax.block_until_ready(conv_block_forward(x, params))
    assert out_bf16.shape == (N, C2 * P), out_bf16.shape
    assert jnp.allclose(out_bf16, ref, rtol=3e-2, atol=3e-2), \
        float(jnp.max(jnp.abs(out_bf16 - ref)))

    print("KERNEL_OK")
</pallas_src>

<mosaic_0001>
module attributes {stable_mosaic.version = 11 : i64} {
  func.func @conv_block_kernel(%arg0: i32, %arg1: memref<8x8x8xf32, #tpu.memory_space<vmem>>, %arg2: memref<8x384xf32, #tpu.memory_space<vmem>>, %arg3: memref<256x256xf32, #tpu.memory_space<vmem>>, %arg4: memref<1x384xf32, #tpu.memory_space<vmem>>, %arg5: memref<1x256xf32, #tpu.memory_space<vmem>>, %arg6: memref<8x256x7xf32, #tpu.memory_space<vmem>>) attributes {dimension_semantics = [#tpu.dimension_semantics<parallel>], iteration_bounds = array<i64: 2>, scalar_prefetch = 0 : i64, scratch_operands = 0 : i64, tpu.core_type = #tpu.core_type<tc>, window_params = [{transform_indices = @transform_0, window_bounds = array<i64: 8, 8, 8>}, {pipeline_mode = #tpu.pipeline_mode<synchronous>, transform_indices = @transform_1, window_bounds = array<i64: 8, 384>}, {pipeline_mode = #tpu.pipeline_mode<synchronous>, transform_indices = @transform_2, window_bounds = array<i64: 256, 256>}, {pipeline_mode = #tpu.pipeline_mode<synchronous>, transform_indices = @transform_3, window_bounds = array<i64: 1, 384>}, {pipeline_mode = #tpu.pipeline_mode<synchronous>, transform_indices = @transform_4, window_bounds = array<i64: 1, 256>}, {transform_indices = @transform_5, window_bounds = array<i64: 8, 256, 7>}]} {
    %c0 = arith.constant 0 : index
    %c0_0 = arith.constant 0 : index
    %c0_1 = arith.constant 0 : index
    %0 = vector.load %arg1[%c0, %c0_0, %c0_1] : memref<8x8x8xf32, #tpu.memory_space<vmem>>, vector<8x8x8xf32>
    %1 = vector.shape_cast %0 : vector<8x8x8xf32> to vector<64x8xf32>
    %c0_2 = arith.constant 0 : index
    %c0_3 = arith.constant 0 : index
    %2 = vector.load %arg2[%c0_2, %c0_3] : memref<8x384xf32, #tpu.memory_space<vmem>>, vector<8x384xf32>
    %cst = arith.constant dense<0.000000e+00> : vector<64x384xf32>
    %3 = tpu.matmul %1, %2, %cst {dimension_numbers = #tpu.dot_dimension_numbers<[1], [0], [0], [1], [0, 0, 1, 1], [], []>} : vector<64x8xf32>, vector<8x384xf32>, vector<64x384xf32> -> vector<64x384xf32>
    %c0_4 = arith.constant 0 : index
    %c0_5 = arith.constant 0 : index
    %4 = vector.load %arg4[%c0_4, %c0_5] : memref<1x384xf32, #tpu.memory_space<vmem>>, vector<1x384xf32>
    %5 = vector.broadcast %4 : vector<1x384xf32> to vector<64x384xf32>
    %6 = arith.addf %3, %5 : vector<64x384xf32>
    %cst_6 = arith.constant 0.000000e+00 : f32
    %7 = vector.broadcast %cst_6 : f32 to vector<64x384xf32>
    %8 = arith.maximumf %6, %7 : vector<64x384xf32>
    %9 = vector.extract_strided_slice %8 {offsets = [0, 0], sizes = [64, 256], strides = [1, 1]} : vector<64x384xf32> to vector<64x256xf32>
    %c0_7 = arith.constant 0 : index
    %c0_8 = arith.constant 0 : index
    %10 = vector.load %arg3[%c0_7, %c0_8] : memref<256x256xf32, #tpu.memory_space<vmem>>, vector<256x256xf32>
    %cst_9 = arith.constant dense<0.000000e+00> : vector<64x256xf32>
    %11 = tpu.matmul %9, %10, %cst_9 {dimension_numbers = #tpu.dot_dimension_numbers<[1], [0], [0], [1], [0, 0, 1, 1], [], []>} : vector<64x256xf32>, vector<256x256xf32>, vector<64x256xf32> -> vector<64x256xf32>
    %12 = vector.extract_strided_slice %8 {offsets = [0, 128], sizes = [64, 256], strides = [1, 1]} : vector<64x384xf32> to vector<64x256xf32>
    %c0_10 = arith.constant 0 : index
    %c0_11 = arith.constant 0 : index
    %13 = vector.load %arg3[%c0_10, %c0_11] : memref<256x256xf32, #tpu.memory_space<vmem>>, vector<256x256xf32>
    %cst_12 = arith.constant dense<0.000000e+00> : vector<64x256xf32>
    %14 = tpu.matmul %12, %13, %cst_12 {dimension_numbers = #tpu.dot_dimension_numbers<[1], [0], [0], [1], [0, 0, 1, 1], [], []>} : vector<64x256xf32>, vector<256x256xf32>, vector<64x256xf32> -> vector<64x256xf32>
    %c0_13 = arith.constant 0 : index
    %c0_14 = arith.constant 0 : index
    %15 = vector.load %arg5[%c0_13, %c0_14] : memref<1x256xf32, #tpu.memory_space<vmem>>, vector<1x256xf32>
    %16 = vector.broadcast %15 : vector<1x256xf32> to vector<64x256xf32>
    %17 = arith.addf %11, %16 : vector<64x256xf32>
    %cst_15 = arith.constant 0.000000e+00 : f32
    %18 = vector.broadcast %cst_15 : f32 to vector<64x256xf32>
    %19 = arith.maximumf %17, %18 : vector<64x256xf32>
    %c0_16 = arith.constant 0 : index
    %c0_17 = arith.constant 0 : index
    %20 = vector.load %arg5[%c0_16, %c0_17] : memref<1x256xf32, #tpu.memory_space<vmem>>, vector<1x256xf32>
    %21 = vector.broadcast %20 : vector<1x256xf32> to vector<64x256xf32>
    %22 = arith.addf %14, %21 : vector<64x256xf32>
    %cst_18 = arith.constant 0.000000e+00 : f32
    %23 = vector.broadcast %cst_18 : f32 to vector<64x256xf32>
    %24 = arith.maximumf %22, %23 : vector<64x256xf32>
    %25 = arith.addf %19, %24 : vector<64x256xf32>
    %cst_19 = arith.constant 5.000000e-01 : f32
    %26 = vector.broadcast %cst_19 : f32 to vector<64x256xf32>
    %27 = arith.mulf %26, %25 : vector<64x256xf32>
    %28 = vector.shape_cast %27 : vector<64x256xf32> to vector<8x8x256xf32>
    %29 = vector.extract_strided_slice %28 {offsets = [0, 0, 0], sizes = [1, 8, 256], strides = [1, 1, 1]} : vector<8x8x256xf32> to vector<1x8x256xf32>
    %30 = vector.shape_cast %29 : vector<1x8x256xf32> to vector<8x256xf32>
    %31 = tpu.transpose %30, [1, 0] : vector<8x256xf32> -> vector<256x8xf32>
    %32 = vector.extract_strided_slice %31 {offsets = [0, 0], sizes = [256, 7], strides = [1, 1]} : vector<256x8xf32> to vector<256x7xf32>
    %c0_20 = arith.constant 0 : index
    %c0_21 = arith.constant 0 : index
    %c0_22 = arith.constant 0 : index
    %33 = vector.load %arg6[%c0_20, %c0_21, %c0_22] : memref<8x256x7xf32, #tpu.memory_space<vmem>>, vector<1x256x7xf32>
    %34 = vector.shape_cast %33 : vector<1x256x7xf32> to vector<256x7xf32>
    %35 = vector.shape_cast %32 : vector<256x7xf32> to vector<1x256x7xf32>
    tpu.vector_store %arg6[%c0_20, %c0_21, %c0_22], %35 {strides = array<i32>} : memref<8x256x7xf32, #tpu.memory_space<vmem>>, vector<1x256x7xf32>,
    %36 = vector.extract_strided_slice %28 {offsets = [1, 0, 0], sizes = [1, 8, 256], strides = [1, 1, 1]} : vector<8x8x256xf32> to vector<1x8x256xf32>
    %37 = vector.shape_cast %36 : vector<1x8x256xf32> to vector<8x256xf32>
    %38 = tpu.transpose %37, [1, 0] : vector<8x256xf32> -> vector<256x8xf32>
    %39 = vector.extract_strided_slice %38 {offsets = [0, 0], sizes = [256, 7], strides = [1, 1]} : vector<256x8xf32> to vector<256x7xf32>
    %c1 = arith.constant 1 : index
    %c0_23 = arith.constant 0 : index
    %c0_24 = arith.constant 0 : index
    %40 = vector.load %arg6[%c1, %c0_23, %c0_24] : memref<8x256x7xf32, #tpu.memory_space<vmem>>, vector<1x256x7xf32>
    %41 = vector.shape_cast %40 : vector<1x256x7xf32> to vector<256x7xf32>
    %42 = vector.shape_cast %39 : vector<256x7xf32> to vector<1x256x7xf32>
    tpu.vector_store %arg6[%c1, %c0_23, %c0_24], %42 {strides = array<i32>} : memref<8x256x7xf32, #tpu.memory_space<vmem>>, vector<1x256x7xf32>,
    %43 = vector.extract_strided_slice %28 {offsets = [2, 0, 0], sizes = [1, 8, 256], strides = [1, 1, 1]} : vector<8x8x256xf32> to vector<1x8x256xf32>
    %44 = vector.shape_cast %43 : vector<1x8x256xf32> to vector<8x256xf32>
    %45 = tpu.transpose %44, [1, 0] : vector<8x256xf32> -> vector<256x8xf32>
    %46 = vector.extract_strided_slice %45 {offsets = [0, 0], sizes = [256, 7], strides = [1, 1]} : vector<256x8xf32> to vector<256x7xf32>
    %c2 = arith.constant 2 : index
    %c0_25 = arith.constant 0 : index
    %c0_26 = arith.constant 0 : index
    %47 = vector.load %arg6[%c2, %c0_25, %c0_26] : memref<8x256x7xf32, #tpu.memory_space<vmem>>, vector<1x256x7xf32>
    %48 = vector.shape_cast %47 : vector<1x256x7xf32> to vector<256x7xf32>
    %49 = vector.shape_cast %46 : vector<256x7xf32> to vector<1x256x7xf32>
    tpu.vector_store %arg6[%c2, %c0_25, %c0_26], %49 {strides = array<i32>} : memref<8x256x7xf32, #tpu.memory_space<vmem>>, vector<1x256x7xf32>,
    %50 = vector.extract_strided_slice %28 {offsets = [3, 0, 0], sizes = [1, 8, 256], strides = [1, 1, 1]} : vector<8x8x256xf32> to vector<1x8x256xf32>
    %51 = vector.shape_cast %50 : vector<1x8x256xf32> to vector<8x256xf32>
    %52 = tpu.transpose %51, [1, 0] : vector<8x256xf32> -> vector<256x8xf32>
    %53 = vector.extract_strided_slice %52 {offsets = [0, 0], sizes = [256, 7], strides = [1, 1]} : vector<256x8xf32> to vector<256x7xf32>
    %c3 = arith.constant 3 : index
    %c0_27 = arith.constant 0 : index
    %c0_28 = arith.constant 0 : index
    %54 = vector.load %arg6[%c3, %c0_27, %c0_28] : memref<8x256x7xf32, #tpu.memory_space<vmem>>, vector<1x256x7xf32>
    %55 = vector.shape_cast %54 : vector<1x256x7xf32> to vector<256x7xf32>
    %56 = vector.shape_cast %53 : vector<256x7xf32> to vector<1x256x7xf32>
    tpu.vector_store %arg6[%c3, %c0_27, %c0_28], %56 {strides = array<i32>} : memref<8x256x7xf32, #tpu.memory_space<vmem>>, vector<1x256x7xf32>,
    %57 = vector.extract_strided_slice %28 {offsets = [4, 0, 0], sizes = [1, 8, 256], strides = [1, 1, 1]} : vector<8x8x256xf32> to vector<1x8x256xf32>
    %58 = vector.shape_cast %57 : vector<1x8x256xf32> to vector<8x256xf32>
    %59 = tpu.transpose %58, [1, 0] : vector<8x256xf32> -> vector<256x8xf32>
    %60 = vector.extract_strided_slice %59 {offsets = [0, 0], sizes = [256, 7], strides = [1, 1]} : vector<256x8xf32> to vector<256x7xf32>
    %c4 = arith.constant 4 : index
    %c0_29 = arith.constant 0 : index
    %c0_30 = arith.constant 0 : index
    %61 = vector.load %arg6[%c4, %c0_29, %c0_30] : memref<8x256x7xf32, #tpu.memory_space<vmem>>, vector<1x256x7xf32>
    %62 = vector.shape_cast %61 : vector<1x256x7xf32> to vector<256x7xf32>
    %63 = vector.shape_cast %60 : vector<256x7xf32> to vector<1x256x7xf32>
    tpu.vector_store %arg6[%c4, %c0_29, %c0_30], %63 {strides = array<i32>} : memref<8x256x7xf32, #tpu.memory_space<vmem>>, vector<1x256x7xf32>,
    %64 = vector.extract_strided_slice %28 {offsets = [5, 0, 0], sizes = [1, 8, 256], strides = [1, 1, 1]} : vector<8x8x256xf32> to vector<1x8x256xf32>
    %65 = vector.shape_cast %64 : vector<1x8x256xf32> to vector<8x256xf32>
    %66 = tpu.transpose %65, [1, 0] : vector<8x256xf32> -> vector<256x8xf32>
    %67 = vector.extract_strided_slice %66 {offsets = [0, 0], sizes = [256, 7], strides = [1, 1]} : vector<256x8xf32> to vector<256x7xf32>
    %c5 = arith.constant 5 : index
    %c0_31 = arith.constant 0 : index
    %c0_32 = arith.constant 0 : index
    %68 = vector.load %arg6[%c5, %c0_31, %c0_32] : memref<8x256x7xf32, #tpu.memory_space<vmem>>, vector<1x256x7xf32>
    %69 = vector.shape_cast %68 : vector<1x256x7xf32> to vector<256x7xf32>
    %70 = vector.shape_cast %67 : vector<256x7xf32> to vector<1x256x7xf32>
    tpu.vector_store %arg6[%c5, %c0_31, %c0_32], %70 {strides = array<i32>} : memref<8x256x7xf32, #tpu.memory_space<vmem>>, vector<1x256x7xf32>,
    %71 = vector.extract_strided_slice %28 {offsets = [6, 0, 0], sizes = [1, 8, 256], strides = [1, 1, 1]} : vector<8x8x256xf32> to vector<1x8x256xf32>
    %72 = vector.shape_cast %71 : vector<1x8x256xf32> to vector<8x256xf32>
    %73 = tpu.transpose %72, [1, 0] : vector<8x256xf32> -> vector<256x8xf32>
    %74 = vector.extract_strided_slice %73 {offsets = [0, 0], sizes = [256, 7], strides = [1, 1]} : vector<256x8xf32> to vector<256x7xf32>
    %c6 = arith.constant 6 : index
    %c0_33 = arith.constant 0 : index
    %c0_34 = arith.constant 0 : index
    %75 = vector.load %arg6[%c6, %c0_33, %c0_34] : memref<8x256x7xf32, #tpu.memory_space<vmem>>, vector<1x256x7xf32>
    %76 = vector.shape_cast %75 : vector<1x256x7xf32> to vector<256x7xf32>
    %77 = vector.shape_cast %74 : vector<256x7xf32> to vector<1x256x7xf32>
    tpu.vector_store %arg6[%c6, %c0_33, %c0_34], %77 {strides = array<i32>} : memref<8x256x7xf32, #tpu.memory_space<vmem>>, vector<1x256x7xf32>,
    %78 = vector.extract_strided_slice %28 {offsets = [7, 0, 0], sizes = [1, 8, 256], strides = [1, 1, 1]} : vector<8x8x256xf32> to vector<1x8x256xf32>
    %79 = vector.shape_cast %78 : vector<1x8x256xf32> to vector<8x256xf32>
    %80 = tpu.transpose %79, [1, 0] : vector<8x256xf32> -> vector<256x8xf32>
    %81 = vector.extract_strided_slice %80 {offsets = [0, 0], sizes = [256, 7], strides = [1, 1]} : vector<256x8xf32> to vector<256x7xf32>
    %c7 = arith.constant 7 : index
    %c0_35 = arith.constant 0 : index
    %c0_36 = arith.constant 0 : index
    %82 = vector.load %arg6[%c7, %c0_35, %c0_36] : memref<8x256x7xf32, #tpu.memory_space<vmem>>, vector<1x256x7xf32>
    %83 = vector.shape_cast %82 : vector<1x256x7xf32> to vector<256x7xf32>
    %84 = vector.shape_cast %81 : vector<256x7xf32> to vector<1x256x7xf32>
    tpu.vector_store %arg6[%c7, %c0_35, %c0_36], %84 {strides = array<i32>} : memref<8x256x7xf32, #tpu.memory_space<vmem>>, vector<1x256x7xf32>,
    return
  }
  func.func @transform_0(%arg0: i32) -> (i32, i32, i32) {
    %c0_i32 = arith.constant 0 : i32
    %c0_i32_0 = arith.constant 0 : i32
    %c0_i32_1 = arith.constant 0 : i32
    return %arg0, %c0_i32, %c0_i32_0 : i32, i32, i32
  }
  func.func @transform_1(%arg0: i32) -> (i32, i32) {
    %c0_i32 = arith.constant 0 : i32
    %c0_i32_0 = arith.constant 0 : i32
    %c0_i32_1 = arith.constant 0 : i32
    return %c0_i32, %c0_i32_0 : i32, i32
  }
  func.func @transform_2(%arg0: i32) -> (i32, i32) {
    %c0_i32 = arith.constant 0 : i32
    %c0_i32_0 = arith.constant 0 : i32
    %c0_i32_1 = arith.constant 0 : i32
    return %c0_i32, %c0_i32_0 : i32, i32
  }
  func.func @transform_3(%arg0: i32) -> (i32, i32) {
    %c0_i32 = arith.constant 0 : i32
    %c0_i32_0 = arith.constant 0 : i32
    %c0_i32_1 = arith.constant 0 : i32
    return %c0_i32, %c0_i32_0 : i32, i32
  }
  func.func @transform_4(%arg0: i32) -> (i32, i32) {
    %c0_i32 = arith.constant 0 : i32
    %c0_i32_0 = arith.constant 0 : i32
    %c0_i32_1 = arith.constant 0 : i32
    return %c0_i32, %c0_i32_0 : i32, i32
  }
  func.func @transform_5(%arg0: i32) -> (i32, i32, i32) {
    %c0_i32 = arith.constant 0 : i32
    %c0_i32_0 = arith.constant 0 : i32
    %c0_i32_1 = arith.constant 0 : i32
    return %arg0, %c0_i32, %c0_i32_0 : i32, i32, i32
  }
}

</mosaic_0001>

<bundles_post_ra>
// kernel: tpu_custom_call.1
= control target key start
LH: loop header
LB: loop body
LE: loop exit
PB: predicated region body
PF: predicated region fallthrough
CT: control target
= control target key end

     0   :  { %10 = vsyncpa [#allocation3], 0  ;;  %s3572_s0 = inlined_call_operand.hbm [shape: f32[16,8,8], index: 0, kind: input, shape index: {}]   ;;  %s3573_s1 = inlined_call_operand.hbm [shape: f32[8,384], index: 1, kind: input, shape index: {}]   ;;  %s3574_s2 = inlined_call_operand.hbm [shape: f32[256,256], index: 2, kind: input, shape index: {}]   ;;  %s3575_s3 = inlined_call_operand.hbm [shape: f32[1,384], index: 3, kind: input, shape index: {}]   ;;  %s3576_s4 = inlined_call_operand.hbm [shape: f32[1,256], index: 4, kind: input, shape index: {}]   ;;  %s3577_s5 = inlined_call_operand.hbm [shape: f32[16,256,7], index: 5, kind: output, shape index: {}]  }
   0x1   :  { %12 = vsyncpa [#allocation3 + $0x1], 0 }
   0x2   :  { %13 = vsyncpa [#allocation6], 0 }
   0x3   :  { %14 = vsyncpa [#allocation9], 0 }
   0x4   :  { %15 = vsyncpa [#allocation4], 0 }
   0x5   :  { %17 = vsyncpa [#allocation4 + $0x1], 0  ;;  %s2632_s18 = smov 0   ;;  %s2634_s19 = smov 0  }
   0x6   :  { %s2636_s20 = smov 0   ;;  %s2638_s21 = smov 0  }
   0x7 LB: > { %s2653_s22 = sadd.s32 4294967295, %s2587_s21   ;;  %s1860_s23 = sadd.s32 4294967294, %s2587_s21   ;;  %s2587_s21 = sphi %s2638_s21, %s3600_s21   ;;  %s2583_s20 = sphi %s2636_s20, %s3599_s20   ;;  %s2579_s19 = sphi %s2634_s19, %s3598_s19   ;;  %s2575_s18 = sphi %s2632_s18, %s3597_s18  }
   0x8   : > { %p43_p0 = scmp.ne.s32.totalorder %s2579_s19, %s2575_s18  ;;  %p3578_p1 = scmp.eq.s32.totalorder %s2653_s22, 0 }
   0x9   : > { %p157_p3 = scmp.eq.s32.totalorder %s1860_s23, 1  ;;  %p1861_p5 = scmp.ge.s32.totalorder %s2587_s21, 1 }
   0xa   : > { %p2662_p4 = por %p3578_p1, %p43_p0  ;;  %p164_p7 = scmp.lt.s32.totalorder %s2587_s21, 3 }
   0xb   : > { %p2667_p6 = por %p157_p3, %p43_p0  ;;  %s2589_s27 = smov [#allocation5]  }
   0xc   : > { %s3581_s24 = scalar_select %p2662_p4, 1, 0 }
   0xd   : > { %s3582_s25 = scalar_select %p2667_p6, 1, 0 }
   0xe   : > { %p2672_p8 = pnand %p1861_p5, %p164_p7  ;;  %s177_s28 = sshll.u32 %s2589_s27, 4  ;;  %s178_s28 = int_to_ptr.vmem [resolvable:$true] %s177_s28 }
   0xf   : > { %s2590_s29 = smov [#allocation8]   ;;  %s2591_s7 = smov [#allocation7]  }
  0x10   : > { %s3583_s26 = scalar_select %p2672_p8, 1, 0 }
  0x11   : > { %p2297_p10 = pneg %p2672_p8  ;;  %s201_s30 = sshll.u32 %s2590_s29, 4  ;;  %s2685_s30 = int_to_ptr.vmem [resolvable:$true] %s201_s30 }
  0x12   : > { %s187_s8 = sshll.u32 %s2591_s7, 4  ;;  %s2371_s11 = scalar_lea.hbm %s3573_s1, 384  ;;  %s2687_s8 = int_to_ptr.vmem [resolvable:$true] %s187_s8 }
  0x13   : > { %p2681_p11 = pnand %p2297_p10, %p3578_p1  ;;  %p2372_p12 = scmp.ne.s32.totalorder %s3573_s1, %s2371_s11 }
  0x14   : > { %p2378_p5 = scmp.lt.u32.totalorder %s2371_s11, %s3573_s1 }
  0x15   : > { %p2697_p13 = pneg %p2681_p11 }
  0x17   : > { %p2374_p0 = pnand %p2697_p13, %p2372_p12 }
  0x19   : > { %p2375_p3 = pneg %p2374_p0 }
  0x1b   : > { %p2380_p7 = pnand %p2378_p5, %p2375_p3 }
  0x1d   : > { %2383 = shalt.err (!%p2380_p7)
}
  0x1e   : > { %s2384_s17 = scalar_lea.vmem %s178_s28, 384  ;;  %p2392_p2 = scmp.lt.s32.totalorder %s178_s28, %s178_s28 }
  0x1f   : > { %p2385_p10 = scmp.ne.s32.totalorder %s178_s28, %s2384_s17  ;;  %p2393_p6 = scmp.lt.s32.totalorder %s2384_s17, %s2384_s17 }
  0x21   : > { %p2387_p9 = pnand %p2385_p10, %p2697_p13  ;;  %p2394_p4 = por %p2393_p6, %p2392_p2 }
  0x23   : > { %p2388_p1 = pneg %p2387_p9 }
  0x25   : > { %p2395_p8 = pnand %p2394_p4, %p2388_p1 }
  0x27   : > { %2398 = shalt.err (!%p2395_p8)
}
  0x28   : > { %2300 = dma.hbm_to_vmem [thread:$0]  (!%p2681_p11), %s3573_s1, 384, %s178_s28, [#allocation6]  }
  0x29   : > { %s2399_s9 = scalar_lea.hbm %s3575_s3, 48 }
  0x2a   : > { %p2400_p9 = scmp.ne.s32.totalorder %s3575_s3, %s2399_s9  ;;  %p2406_p1 = scmp.lt.u32.totalorder %s2399_s9, %s3575_s3 }
  0x2c   : > { %p2402_p12 = pnand %p2400_p9, %p2697_p13 }
  0x2e   : > { %p2403_p2 = pneg %p2402_p12 }
  0x30   : > { %p2408_p4 = pnand %p2406_p1, %p2403_p2 }
  0x32   : > { %2411 = shalt.err (!%p2408_p4)
}
  0x33   : > { %s2412_s28 = scalar_lea.vmem %s2685_s30, 48  ;;  %s2419_s15 = scalar_lea.vmem %s2685_s30, 64 }
  0x34   : > { %p2413_p6 = scmp.ne.s32.totalorder %s2685_s30, %s2412_s28  ;;  %p2420_p3 = scmp.lt.s32.totalorder %s2685_s30, %s2685_s30 }
  0x35   : > { %p2421_p5 = scmp.lt.s32.totalorder %s2419_s15, %s2412_s28 }
  0x36   : > { %p2415_p8 = pnand %p2413_p6, %p2697_p13 }
  0x37   : > { %p2422_p7 = por %p2421_p5, %p2420_p3 }
  0x38   : > { %p2416_p0 = pneg %p2415_p8 }
  0x3a   : > { %p2423_p10 = pnand %p2422_p7, %p2416_p0 }
  0x3c   : > { %2426 = shalt.err (!%p2423_p10)
}
  0x3d   : > { %2306 = dma.hbm_to_vmem [thread:$0]  (!%p2681_p11), %s3575_s3, 48, %s2685_s30, [#allocation9]  }
  0x3e   : > { %s2427_s29 = scalar_lea.hbm %s3574_s2, 8192 }
  0x3f   : > { %p2428_p9 = scmp.ne.s32.totalorder %s3574_s2, %s2427_s29  ;;  %p2434_p1 = scmp.lt.u32.totalorder %s2427_s29, %s3574_s2 }
  0x41   : > { %p2430_p12 = pnand %p2428_p9, %p2697_p13 }
  0x43   : > { %p2431_p2 = pneg %p2430_p12 }
  0x45   : > { %p2436_p4 = pnand %p2434_p1, %p2431_p2 }
  0x47   : > { %2439 = shalt.err (!%p2436_p4)
}
  0x48   : > { %s2440_s30 = scalar_lea.vmem %s2687_s8, 8192  ;;  %p2448_p3 = scmp.lt.s32.totalorder %s2687_s8, %s2687_s8 }
  0x49   : > { %p2441_p6 = scmp.ne.s32.totalorder %s2687_s8, %s2440_s30  ;;  %p2449_p5 = scmp.lt.s32.totalorder %s2440_s30, %s2440_s30 }
  0x4b   : > { %p2443_p8 = pnand %p2441_p6, %p2697_p13  ;;  %p2450_p7 = por %p2449_p5, %p2448_p3 }
  0x4d   : > { %p2444_p0 = pneg %p2443_p8 }
  0x4f   : > { %p2451_p10 = pnand %p2450_p7, %p2444_p0 }
  0x51   : > { %2454 = shalt.err (!%p2451_p10)
}
  0x52   : > { %s2592_s12 = smov 256   ;;  %s2593_s13 = smov 16  }
  0x53   : > { %2303 = dma.hbm_to_vmem [thread:$0]  (!%p2681_p11), %s3574_s2, 8192, %s2687_s8, [#allocation6], %s2592_s12, %s2592_s12, %s2593_s13  }
  0x54   : > { %s2594_s16 = smov [#allocation10]   ;;  %s2455_s29 = scalar_lea.hbm %s3576_s4, 32 }
  0x55   : > { %s212_s17 = sshll.u32 %s2594_s16, 4  ;;  %p2456_p9 = scmp.ne.s32.totalorder %s3576_s4, %s2455_s29  ;;  %s213_s17 = int_to_ptr.vmem [resolvable:$true] %s212_s17 }
  0x56   : > { %p2462_p1 = scmp.lt.u32.totalorder %s2455_s29, %s3576_s4 }
  0x57   : > { %p2458_p12 = pnand %p2456_p9, %p2697_p13 }
  0x59   : > { %p2459_p2 = pneg %p2458_p12 }
  0x5b   : > { %p2464_p4 = pnand %p2462_p1, %p2459_p2 }
  0x5d   : > { %2467 = shalt.err (!%p2464_p4)
}
  0x5e   : > { %s2468_s8 = scalar_lea.vmem %s213_s17, 32  ;;  %p2476_p3 = scmp.lt.s32.totalorder %s213_s17, %s213_s17 }
  0x5f   : > { %p2469_p6 = scmp.ne.s32.totalorder %s213_s17, %s2468_s8  ;;  %p2477_p5 = scmp.lt.s32.totalorder %s2468_s8, %s2468_s8 }
  0x61   : > { %p2471_p8 = pnand %p2469_p6, %p2697_p13  ;;  %p2478_p7 = por %p2477_p5, %p2476_p3 }
  0x63   : > { %p2472_p0 = pneg %p2471_p8 }
  0x65   : > { %p2479_p10 = pnand %p2478_p7, %p2472_p0 }
  0x67   : > { %2482 = shalt.err (!%p2479_p10)
}
  0x68   : > { %2309 = dma.hbm_to_vmem [thread:$0]  (!%p2681_p11), %s3576_s4, 32, %s213_s17, [#allocation9]  }
  0x69   : > { %s2779_s14 = sadd.s32 1, %s2587_s21   ;;  %s30_s13 = sadd.s32 1, %s2583_s20 }
  0x6a   : > { %s27_s6 = ssub.s32 %s2587_s21, %s2779_s14  ;;  %p37_p13 = scmp.ne.s32.totalorder %s2583_s20, %s2579_s19 }
  0x6b   : > { %p28_p9 = scmp.eq.s32.totalorder %s27_s6, 0  ;;  %p38_p12 = scmp.eq.s32.totalorder %s2587_s21, 0 }
  0x6c   : > { %p3586_p2 = scmp.eq.s32.totalorder %s2653_s22, 1  ;;  %p2322_p4 = scmp.lt.s32.totalorder %s2587_s21, 2 }
  0x6d   : > { %s2795_s15 = scalar_select %p28_p9, %s2583_s20, %s30_s13  }
  0x6e   : > { %p2789_p1 = por %p3586_p2, %p37_p13  ;;  %p39_p6 = por %p38_p12, %p37_p13 }
  0x6f   : > { %s223_s16 = sand.u32 1, %s2583_s20   ;;  %s2123_s17 = sshll.u32 %s2587_s21, 10 }
  0x70   : > { %s1867_s23 = sshll.u32 %s223_s16, 6  ;;  %s2802_s7 = scalar_lea.hbm %s3572_s0, %s2123_s17 }
  0x71   : > { %s227_s9 = scalar_lea.vmem [#allocation2], %s1867_s23  ;;  %p2806_p11 = pnand %p2322_p4, %p39_p6 }
  0x72   : > { %s234_s10 = sshll.u32 %s227_s9, 4  ;;  %s2810_s8 = scalar_lea.sflag [#allocation3], %s223_s16  ;;  %s2804_s10 = int_to_ptr.vmem [resolvable:$true] %s234_s10 }
  0x73   : > { %s2483_s30 = scalar_lea.hbm %s2802_s7, 1024  ;;  %p2485_p0 = pneg %p2806_p11 }
  0x74   : > { %p2484_p8 = scmp.ne.s32.totalorder %s2802_s7, %s2483_s30  ;;  %s2488_s6 = scalar_lea.hbm %s3572_s0, 2048 }
  0x75   : > { %p2489_p7 = scmp.lt.u32.totalorder %s2802_s7, %s3572_s0  ;;  %p2490_p10 = scmp.lt.u32.totalorder %s2488_s6, %s2483_s30 }
  0x76   : > { %p2486_p3 = pnand %p2485_p0, %p2484_p8  ;;  %p2492_p9 = scmp.lt.u32.totalorder %s2483_s30, %s2802_s7 }
  0x77   : > { %p2491_p13 = por %p2490_p10, %p2489_p7 }
  0x78   : > { %p2487_p5 = pneg %p2486_p3 }
  0x79   : > { %p2493_p12 = por %p2492_p9, %p2491_p13 }
  0x7b   : > { %p2494_p2 = pnand %p2493_p12, %p2487_p5 }
  0x7d   : > { %2497 = shalt.err (!%p2494_p2)
}
  0x7e   : > { %s2498_s16 = scalar_lea.vmem %s2804_s10, 1024  ;;  %s2595_s27 = smov [#allocation2]  }
  0x7f   : > { %p2499_p4 = scmp.ne.s32.totalorder %s2804_s10, %s2498_s16  ;;  %s2503_s29 = sshll.u32 %s2595_s27, 4  ;;  %s2504_s29 = int_to_ptr.vmem [resolvable:$false] %s2503_s29 }
  0x80   : > { %s2505_s9 = scalar_lea.vmem %s2504_s29, 2048  ;;  %p2506_p3 = scmp.lt.s32.totalorder %s2804_s10, %s2504_s29 }
  0x81   : > { %p2501_p6 = pnand %p2499_p4, %p2485_p0  ;;  %p2507_p7 = scmp.lt.s32.totalorder %s2505_s9, %s2498_s16 }
  0x83   : > { %p2502_p8 = pneg %p2501_p6  ;;  %p2508_p10 = por %p2507_p7, %p2506_p3 }
  0x85   : > { %p2509_p13 = pnand %p2508_p10, %p2502_p8 }
  0x87   : > { %2512 = shalt.err (!%p2509_p13)
}
  0x88   : > { %s2596_s30 = smov 128   ;;  %s2597_s12 = smov 8  }
  0x89   : > { %2313 = dma.hbm_to_vmem [thread:$0]  (!%p2806_p11), %s2802_s7, 1024, %s2804_s10, %s2810_s8, %s2596_s30, %s2596_s30, %s2597_s12  }
  0x8a   : > { %p3589_p0 = scmp.ne.s32.totalorder %s3583_s26, 0 }
  0x8b   : > { %s2841_s13 = sand.u32 (!%p3589_p0), 1, %s2579_s19   ;;  %p3590_p5 = scmp.ne.s32.totalorder (!%p3589_p0), %s3581_s24, 0 }
  0x8c   : > { %246 = sbr.rel (%p3589_p0) target bundleno = 1253 (0x4e5), region = 40  ;;  %s1871_s6 = sshll.u32 (!%p3589_p0), %s2841_s13, 6 }
  0x8d   : > { %s249_s23 = scalar_lea.sflag (!%p3589_p0), [#allocation3], %s2841_s13  ;;  %s2845_s17 = scalar_lea.vmem (!%p3589_p0), [#allocation2], %s1871_s6 }
  0x93   : > { %2558 = dma.done.wait (%p3590_p5), %s249_s23, 1024  }
  0x94   : > { %2560 = vsyncadd (%p3590_p5), %s249_s23, 4294966272  ;;  %p3591_p11 = scmp.eq.s32.totalorder %s2653_s22, 0 }
  0x96   : > { %2562 = dma.done.wait (%p3591_p11), [#allocation6], 8576   ;;  %p3592_p9 = pmov %p3591_p11 }
  0x98   : > { %2564 = vsyncadd (%p3592_p9), [#allocation6], 4294958720  ;;  %p3593_p12 = pmov %p3592_p9 }
  0x99   : > { %p3594_p2 = pmov %p3592_p9 }
  0x9a   : > { %2566 = dma.done.wait (%p3593_p12), [#allocation9], 80  }
  0x9b   : > { %2568 = vsyncadd (%p3594_p2), [#allocation9], 4294967216  ;;  %v2598_v0 = vmov 0.0   ;;  %v306_v1 = vld [vmem:[#allocation5 + $0x8] sm:$0xff]  ;;  %v307_v2 = vld [vmem:[#allocation5 + $0x10] sm:$0xff]  ;;  %vm325_vm0 = vcmask 64512  }
  0x9c   : > { %414 = vmatprep.mubr.f32.mxu0 %v2598_v0  ;;  %v305_v3 = vld [vmem:[#allocation5] sm:$0xff]  ;;  %350 = vmatprep.subr.mxu0 %v306_v1  ;;  %v298_v5 = vld [vmem:[%s2845_s17 + $0x8] sm:$0xff]  ;;  %v299_v6 = vld [vmem:[%s2845_s17 + $0x10] sm:$0xff]  ;;  %s1876_s24 = sshll.u32 %s2841_s13, 11  ;;  %vm1022_vm1 = vcmask 56320   ;;  %s2125_s7 = sshll.u32 %s2653_s22, 15 }
  0x9d   : > { %2135 = vmatprep.subr.mxu1 %v307_v2  ;;  %v297_v4 = vld [vmem:[%s2845_s17] sm:$0xff]  ;;  %351 = vmatpush1.msra.mxu0 %v305_v3  ;;  %v595_v8 = vld [vmem:[#allocation7 + $0x18] sm:$0xff]  ;;  %v592_v10 = vld [vmem:[#allocation7] sm:$0xff]  ;;  %s2997_s26 = scalar_lea.vmem [#allocation11], %s1876_s24  ;;  %s3524_s16 = scalar_lea.hbm %s3577_s5, %s2125_s7 }
  0x9e   : > { %2136 = vmatpush3.msra.mxu1 %v307_v2  ;;  %v593_v7 = vld [vmem:[#allocation7 + $0x8] sm:$0xff]  ;;  %2137 = vmatprep.mubr.msk.f32.mxu1 %vm325_vm0, %v297_v4  ;;  %v594_v11 = vld [vmem:[#allocation7 + $0x10] sm:$0xff]  ;;  %v599_v14 = vld [vmem:[#allocation7 + $0x38] sm:$0xff]  ;;  %s1749_s10 = sshll.u32 %s2997_s26, 4  ;;  %s1735_s22 = scalar_lea.sflag [#allocation4], %s2841_s13  ;;  %s3526_s10 = int_to_ptr.vmem [resolvable:$true] %s1749_s10 }
  0x9f   : > { %1877 = vmatmul.mubr.msk.f32.vlgmr.msra.gmra.mrb[0].mxu0 %vm325_vm0, %v297_v4  ;;  %v2149_v9 = vpack.c.bf16 %v595_v8, %v593_v7  ;;  %v597_v12 = vld [vmem:[#allocation7 + $0x28] sm:$0xff]  ;;  %2138 = vmatmul.mubr.msk.f32.vlgmr.msra.gmra.mrb[0].mxu1 %vm325_vm0, %v298_v5  ;;  %v2151_v13 = vpack.c.bf16 %v594_v11, %v592_v10  ;;  %v596_v15 = vld [vmem:[#allocation7 + $0x20] sm:$0xff]  ;;  %v598_v16 = vld [vmem:[#allocation7 + $0x30] sm:$0xff]  ;;  %s2513_s27 = scalar_lea.vmem %s3526_s10, 32768  ;;  %s2599_s29 = smov [#allocation11]  }
  0xa0   : > { %420 = vmatprep.mubr.f32.mxu0 %v2598_v0  ;;  %2140 = vmatprep.mubr.msk.f32.mxu1 %vm325_vm0, %v299_v6  ;;  %v300_v17 = vld [vmem:[%s2845_s17 + $0x18] sm:$0xff]  ;;  %v2153_v18 = vpack.c.bf16 %v599_v14, %v597_v12  ;;  %v601_v19 = vld [vmem:[#allocation7 + $0x48] sm:$0xff]  ;;  %v603_v20 = vld [vmem:[#allocation7 + $0x58] sm:$0xff]  ;;  %v2155_v21 = vpack.c.bf16 %v598_v16, %v596_v15  ;;  %p2514_p4 = scmp.ne.s32.totalorder %s3526_s10, %s2513_s27  ;;  %s2517_s9 = sshll.u32 %s2599_s29, 4  ;;  %s2518_s9 = int_to_ptr.vmem [resolvable:$false] %s2517_s9 }
  0xa1   : > { %2150 = vmatprep.subr.bf16.mxu0 %v2149_v9  ;;  %2214 = vmatprep.subr.bf16.mxu1 %v2149_v9  ;;  %v600_v22 = vld [vmem:[#allocation7 + $0x40] sm:$0xff]  ;;  %v602_v23 = vld [vmem:[#allocation7 + $0x50] sm:$0xff]  ;;  %v2157_v24 = vpack.c.bf16 %v603_v20, %v601_v19  ;;  %v605_v25 = vld [vmem:[#allocation7 + $0x68] sm:$0xff]  ;;  %s2519_s30 = scalar_lea.vmem %s2518_s9, 65536  ;;  %p2520_p3 = scmp.lt.s32.totalorder %s3526_s10, %s2518_s9 }
  0xa2   : > { %2152 = vmatpush1.bf16.msra.mxu0 %v2151_v13  ;;  %2216 = vmatpush1.bf16.msra.mxu1 %v2151_v13  ;;  %v607_v26 = vld [vmem:[#allocation7 + $0x78] sm:$0xff]  ;;  %v2159_v27 = vpack.c.bf16 %v602_v23, %v600_v22  ;;  %v604_v29 = vld [vmem:[#allocation7 + $0x60] sm:$0xff]  ;;  %v606_v30 = vld [vmem:[#allocation7 + $0x70] sm:$0xff]  ;;  %p2515_p6 = pnand %p2514_p4, %p2789_p1  ;;  %p2521_p7 = scmp.lt.s32.totalorder %s2519_s30, %s2513_s27 }
  0xa3   : > { %1878 = vmatmul.mubr.msk.f32.gmra.mrb[2].mxu0 %vm325_vm0, %v298_v5  ;;  %2141 = vmatmul.mubr.msk.f32.gmra.mrb[2].mxu1 %vm325_vm0, %v300_v17  ;;  %v2161_v28 = vpack.c.bf16 %v607_v26, %v605_v25  ;;  %v609_v31 = vld [vmem:[#allocation7 + $0x88] sm:$0xff]  ;;  %v611_v32 = vld [vmem:[#allocation7 + $0x98] sm:$0xff]  ;;  %v2163_v33 = vpack.c.bf16 %v606_v30, %v604_v29  ;;  %v608_v35 = vld [vmem:[#allocation7 + $0x80] sm:$0xff] }
  0xa4   : > { %426 = vmatprep.mubr.f32.mxu0 %v2598_v0  ;;  %2154 = vmatprep.subr.bf16.mxu0 %v2153_v18  ;;  %v2165_v34 = vpack.c.bf16 %v611_v32, %v609_v31  ;;  %v610_v36 = vld [vmem:[#allocation7 + $0x90] sm:$0xff]  ;;  %v613_v37 = vld [vmem:[#allocation7 + $0xa8] sm:$0xff]  ;;  %v615_v38 = vld [vmem:[#allocation7 + $0xb8] sm:$0xff]  ;;  %p2516_p8 = pneg %p2515_p6  ;;  %p2522_p10 = por %p2521_p7, %p2520_p3 }
  0xa5   : > { %2218 = vmatprep.subr.bf16.mxu1 %v2153_v18  ;;  %v301_v39 = vld [vmem:[%s2845_s17 + $0x20] sm:$0xff]  ;;  %v2167_v40 = vpack.c.bf16 %v610_v36, %v608_v35  ;;  %v302_v41 = vld [vmem:[%s2845_s17 + $0x28] sm:$0xff]  ;;  %v2169_v42 = vpack.c.bf16 %v615_v38, %v613_v37  ;;  %v612_v43 = vld [vmem:[#allocation7 + $0xa0] sm:$0xff] }
  0xa6   : > { %2156 = vmatpush1.bf16.msra.mxu0 %v2155_v21  ;;  %2220 = vmatpush1.bf16.msra.mxu1 %v2155_v21  ;;  %v614_v44 = vld [vmem:[#allocation7 + $0xb0] sm:$0xff]  ;;  %v617_v45 = vld [vmem:[#allocation7 + $0xc8] sm:$0xff]  ;;  %v619_v46 = vld [vmem:[#allocation7 + $0xd8] sm:$0xff]  ;;  %p2523_p13 = pnand %p2522_p10, %p2516_p8 }
  0xa7   : > { %1879 = vmatmul.mubr.msk.f32.gmra.mrb[4].mxu0 %vm325_vm0, %v299_v6  ;;  %2158 = vmatprep.subr.bf16.mxu0 %v2157_v24  ;;  %v303_v47 = vld [vmem:[%s2845_s17 + $0x30] sm:$0xff]  ;;  %v2171_v48 = vpack.c.bf16 %v614_v44, %v612_v43  ;;  %v304_v49 = vld [vmem:[%s2845_s17 + $0x38] sm:$0xff]  ;;  %v2173_v50 = vpack.c.bf16 %v619_v46, %v617_v45  ;;  %v618_v52 = vld [vmem:[#allocation7 + $0xd0] sm:$0xff]  ;;  %v310_v44 = vlaneseq }
  0xa8   : > { %2222 = vmatprep.subr.bf16.mxu1 %v2157_v24  ;;  %432 = vmatprep.mubr.f32.mxu0 %v2598_v0  ;;  %v616_v51 = vld [vmem:[#allocation7 + $0xc0] sm:$0xff]  ;;  %v621_v53 = vld [vmem:[#allocation7 + $0xe8] sm:$0xff]  ;;  %v623_v54 = vld [vmem:[#allocation7 + $0xf8] sm:$0xff] }
  0xa9   : > { %2143 = vmatprep.mubr.msk.f32.mxu1 %vm325_vm0, %v301_v39  ;;  %v2175_v55 = vpack.c.bf16 %v618_v52, %v616_v51  ;;  %v2177_v56 = vpack.c.bf16 %v623_v54, %v621_v53  ;;  %v620_v57 = vld [vmem:[#allocation7 + $0xe0] sm:$0xff]  ;;  %v622_v58 = vld [vmem:[#allocation7 + $0xf0] sm:$0xff]  ;;  %v625_v59 = vld [vmem:[#allocation7 + $0x108] sm:$0xff]  ;;  %v2891_v45 = vshrl.u32 %v310_v44, 7 }
  0xaa   : > { %2160 = vmatpush1.bf16.msra.mxu0 %v2159_v27  ;;  %2224 = vmatpush1.bf16.msra.mxu1 %v2159_v27  ;;  %v627_v60 = vld [vmem:[#allocation7 + $0x118] sm:$0xff]  ;;  %v2179_v61 = vpack.c.bf16 %v622_v58, %v620_v57  ;;  %v624_v63 = vld [vmem:[#allocation7 + $0x100] sm:$0xff]  ;;  %v626_v1 = vld [vmem:[#allocation7 + $0x110] sm:$0xff] }
  0xab   : > { %2162 = vmatprep.subr.bf16.mxu0 %v2161_v28  ;;  %2226 = vmatprep.subr.bf16.mxu1 %v2161_v28  ;;  %v2181_v62 = vpack.c.bf16 %v627_v60, %v625_v59  ;;  %v629_v2 = vld [vmem:[#allocation7 + $0x128] sm:$0xff]  ;;  %v631_v3 = vld [vmem:[#allocation7 + $0x138] sm:$0xff]  ;;  %v2183_v4 = vpack.c.bf16 %v626_v1, %v624_v63  ;;  %v628_v6 = vld [vmem:[#allocation7 + $0x120] sm:$0xff]  ;;  %v312_v46 = vsub.s32 0, %v2891_v45 }
  0xac   : > { %1880 = vmatmul.mubr.msk.f32.gmra.mrb[6].mxu0 %vm325_vm0, %v300_v17  ;;  %2144 = vmatmul.mubr.msk.f32.gmra.mrb[4].mxu1 %vm325_vm0, %v302_v41  ;;  %v2185_v5 = vpack.c.bf16 %v631_v3, %v629_v2  ;;  %v630_v7 = vld [vmem:[#allocation7 + $0x130] sm:$0xff]  ;;  %v635_v8 = vld [vmem:[#allocation7 + $0x158] sm:$0xff]  ;;  %v632_v11 = vld [vmem:[#allocation7 + $0x140] sm:$0xff] }
  0xad   : > { %438 = vmatprep.mubr.f32.mxu0 %v2598_v0  ;;  %2146 = vmatprep.mubr.msk.f32.mxu1 %vm325_vm0, %v303_v47  ;;  %v2187_v9 = vpack.c.bf16 %v630_v7, %v628_v6  ;;  %v634_v12 = vld [vmem:[#allocation7 + $0x150] sm:$0xff]  ;;  %v637_v13 = vld [vmem:[#allocation7 + $0x168] sm:$0xff]  ;;  %v639_v14 = vld [vmem:[#allocation7 + $0x178] sm:$0xff] }
  0xae   : > { %2164 = vmatpush1.bf16.msra.mxu0 %v2163_v33  ;;  %2228 = vmatpush1.bf16.msra.mxu1 %v2163_v33  ;;  %v2191_v15 = vpack.c.bf16 %v634_v12, %v632_v11  ;;  %v2193_v16 = vpack.c.bf16 %v639_v14, %v637_v13  ;;  %v636_v17 = vld [vmem:[#allocation7 + $0x160] sm:$0xff]  ;;  %v638_v18 = vld [vmem:[#allocation7 + $0x170] sm:$0xff]  ;;  %v641_v19 = vld [vmem:[#allocation7 + $0x188] sm:$0xff] }
  0xaf   : > { %2166 = vmatprep.subr.bf16.mxu0 %v2165_v34  ;;  %2230 = vmatprep.subr.bf16.mxu1 %v2165_v34  ;;  %v643_v20 = vld [vmem:[#allocation7 + $0x198] sm:$0xff]  ;;  %v2195_v21 = vpack.c.bf16 %v638_v18, %v636_v17  ;;  %v640_v23 = vld [vmem:[#allocation7 + $0x180] sm:$0xff]  ;;  %v642_v24 = vld [vmem:[#allocation7 + $0x190] sm:$0xff] }
  0xb0   : > { %1881 = vmatmul.mubr.msk.f32.gmra.mrb[8].mxu0 %vm325_vm0, %v301_v39  ;;  %2147 = vmatmul.mubr.msk.f32.gmra.mrb[6].mxu1 %vm325_vm0, %v304_v49  ;;  %v2197_v22 = vpack.c.bf16 %v643_v20, %v641_v19  ;;  %v645_v25 = vld [vmem:[#allocation7 + $0x1a8] sm:$0xff]  ;;  %v647_v26 = vld [vmem:[#allocation7 + $0x1b8] sm:$0xff]  ;;  %v2199_v27 = vpack.c.bf16 %v642_v24, %v640_v23  ;;  %v644_v29 = vld [vmem:[#allocation7 + $0x1a0] sm:$0xff] }
  0xb1   : > { %444 = vmatprep.mubr.f32.mxu0 %v2598_v0  ;;  %v2201_v28 = vpack.c.bf16 %v647_v26, %v645_v25  ;;  %v646_v30 = vld [vmem:[#allocation7 + $0x1b0] sm:$0xff]  ;;  %v649_v31 = vld [vmem:[#allocation7 + $0x1c8] sm:$0xff]  ;;  %v651_v32 = vld [vmem:[#allocation7 + $0x1d8] sm:$0xff] }
  0xb2   : > { %2168 = vmatpush1.bf16.msra.mxu0 %v2167_v40  ;;  %2232 = vmatpush1.bf16.msra.mxu1 %v2167_v40  ;;  %v2203_v33 = vpack.c.bf16 %v646_v30, %v644_v29  ;;  %v2205_v34 = vpack.c.bf16 %v651_v32, %v649_v31  ;;  %v648_v35 = vld [vmem:[#allocation7 + $0x1c0] sm:$0xff]  ;;  %v650_v36 = vld [vmem:[#allocation7 + $0x1d0] sm:$0xff]  ;;  %v653_v38 = vld [vmem:[#allocation7 + $0x1e8] sm:$0xff] }
  0xb3   : > { %2170 = vmatprep.subr.bf16.mxu0 %v2169_v42  ;;  %2234 = vmatprep.subr.bf16.mxu1 %v2169_v42  ;;  %v2207_v37 = vpack.c.bf16 %v650_v36, %v648_v35  ;;  %v655_v39 = vld [vmem:[#allocation7 + $0x1f8] sm:$0xff]  ;;  %v654_v42 = vld [vmem:[#allocation7 + $0x1f0] sm:$0xff] }
  0xb4   : > { %1882 = vmatmul.mubr.msk.f32.gmra.mrb[10].mxu0 %vm325_vm0, %v302_v41  ;;  %v2209_v40 = vpack.c.bf16 %v655_v39, %v653_v38  ;;  %v652_v41 = vld [vmem:[#allocation7 + $0x1e0] sm:$0xff] }
  0xb5   : > { %450 = vmatprep.mubr.f32.mxu0 %v2598_v0  ;;  %v2211_v43 = vpack.c.bf16 %v654_v42, %v652_v41 }
  0xb6   : > { %2172 = vmatpush1.bf16.msra.mxu0 %v2171_v48  ;;  %2236 = vmatpush1.bf16.msra.mxu1 %v2171_v48  ;;  %v316_v48 = vsub.s32 1, %v2891_v45 }
  0xb7   : > { %2174 = vmatprep.subr.bf16.mxu0 %v2173_v50  ;;  %2238 = vmatprep.subr.bf16.mxu1 %v2173_v50 }
  0xb8   : > { %1883 = vmatmul.mubr.msk.f32.gmra.mrb[12].mxu0 %vm325_vm0, %v303_v47  ;;  %v308_v47 = vld [vmem:[#allocation8] sm:$0x7] }
  0xb9   : > { %456 = vmatprep.mubr.f32.mxu0 %v2598_v0  ;;  %v633_v0 = vld [vmem:[#allocation7 + $0x148] sm:$0xff]  ;;  %v2898_v50 = vrot.slane %v308_v47, %v312_v46  ;;  %v2902_v51 = vrot.slane %v308_v47, %v316_v48 }
  0xba   : > { %2176 = vmatpush1.bf16.msra.mxu0 %v2175_v55  ;;  %2240 = vmatpush1.bf16.msra.mxu1 %v2175_v55  ;;  %v2189_v10 = vpack.c.bf16 %v635_v8, %v633_v0 }
  0xbb   : > { %2178 = vmatprep.subr.bf16.mxu0 %v2177_v56  ;;  %2242 = vmatprep.subr.bf16.mxu1 %v2177_v56 }
  0xbc   : > { %1884 = vmatmul.mubr.msk.f32.gmra.mrb[14].mxu0 %vm325_vm0, %v304_v49  ;;  %v320_v49 = vsub.s32 2, %v2891_v45 }
  0xbe   : > { %2180 = vmatpush1.bf16.msra.mxu0 %v2179_v61  ;;  %2244 = vmatpush1.bf16.msra.mxu1 %v2179_v61  ;;  %v2904_v52 = vrot.slane %v308_v47, %v320_v49 }
  0xbf   : > { %2182 = vmatprep.subr.bf16.mxu0 %v2181_v62  ;;  %2246 = vmatprep.subr.bf16.mxu1 %v2181_v62 }
  0xc2   : > { %2184 = vmatpush1.bf16.msra.mxu0 %v2183_v4  ;;  %2248 = vmatpush1.bf16.msra.mxu1 %v2183_v4 }
  0xc3   : > { %2186 = vmatprep.subr.bf16.mxu0 %v2185_v5  ;;  %2250 = vmatprep.subr.bf16.mxu1 %v2185_v5 }
  0xc6   : > { %2188 = vmatpush1.bf16.msra.mxu0 %v2187_v9  ;;  %2252 = vmatpush1.bf16.msra.mxu1 %v2187_v9 }
  0xc7   : > { %2190 = vmatprep.subr.bf16.mxu0 %v2189_v10  ;;  %2254 = vmatprep.subr.bf16.mxu1 %v2189_v10 }
  0xca   : > { %2192 = vmatpush1.bf16.msra.mxu0 %v2191_v15  ;;  %2256 = vmatpush1.bf16.msra.mxu1 %v2191_v15 }
  0xcb   : > { %2194 = vmatprep.subr.bf16.mxu0 %v2193_v16  ;;  %2258 = vmatprep.subr.bf16.mxu1 %v2193_v16 }
  0xce   : > { %2196 = vmatpush1.bf16.msra.mxu0 %v2195_v21  ;;  %2260 = vmatpush1.bf16.msra.mxu1 %v2195_v21 }
  0xcf   : > { %2198 = vmatprep.subr.bf16.mxu0 %v2197_v22  ;;  %2262 = vmatprep.subr.bf16.mxu1 %v2197_v22 }
  0xd2   : > { %2200 = vmatpush1.bf16.msra.mxu0 %v2199_v27  ;;  %2264 = vmatpush1.bf16.msra.mxu1 %v2199_v27 }
  0xd3   : > { %2202 = vmatprep.subr.bf16.mxu0 %v2201_v28  ;;  %2266 = vmatprep.subr.bf16.mxu1 %v2201_v28 }
  0xd6   : > { %2204 = vmatpush1.bf16.msra.mxu0 %v2203_v33  ;;  %2268 = vmatpush1.bf16.msra.mxu1 %v2203_v33 }
  0xd7   : > { %2206 = vmatprep.subr.bf16.mxu0 %v2205_v34  ;;  %2270 = vmatprep.subr.bf16.mxu1 %v2205_v34 }
  0xda   : > { %2208 = vmatpush1.bf16.msra.mxu0 %v2207_v37  ;;  %2272 = vmatpush1.bf16.msra.mxu1 %v2207_v37 }
  0xdb   : > { %2210 = vmatprep.subr.bf16.mxu0 %v2209_v40  ;;  %2274 = vmatprep.subr.bf16.mxu1 %v2209_v40 }
  0xde   : > { %2212 = vmatpush1.bf16.msra.mxu0 %v2211_v43  ;;  %2276 = vmatpush1.bf16.msra.mxu1 %v2211_v43 }
 0x172   : > { %v416_v53 = vpop.f32.mrb[0].mxu0  ;;  %v2139_v55 = vpop.f32.mrb[0].mxu1 }
 0x173   : > { %v417_v54 = vadd.f32 %v416_v53, %v2898_v50  ;;  %v418_v56 = vpop.f32.mrb[1].mxu0  ;;  %v529_v58 = vpop.f32.mrb[1].mxu1  ;;  %v535_v59 = vadd.f32 %v2139_v55, %v2904_v52 }
 0x174   : > { %v419_v57 = vadd.f32 %v418_v56, %v2902_v51  ;;  %v530_v60 = vadd.f32 %v529_v58, %v2904_v52 }
 0x175   : > { %v568_v63 = vmax.f32 %v417_v54, 0.0  ;;  %v573_v7 = vmax.f32 %v535_v59, 0.0 }
 0x176   : > { %v569_v61 = vmax.f32 %v419_v57, 0.0  ;;  %v422_v62 = vpop.f32.mrb[2].mxu0  ;;  %v570_v1 = vmax.f32 %v530_v60, 0.0  ;;  %v2142_v4 = vpop.f32.mrb[2].mxu1 }
 0x177   : > { %v423_v2 = vadd.f32 %v422_v62, %v2898_v50  ;;  %v424_v3 = vpop.f32.mrb[3].mxu0  ;;  %v539_v6 = vpop.f32.mrb[3].mxu1  ;;  %v545_v12 = vadd.f32 %v2142_v4, %v2904_v52 }
 0x178   : > { %v425_v5 = vadd.f32 %v424_v3, %v2902_v51  ;;  %732 = vmatprep.mubr.f32.mxu0 %v569_v61  ;;  %861 = vmatprep.mubr.f32.mxu1 %v570_v1  ;;  %v540_v0 = vadd.f32 %v539_v6, %v2904_v52  ;;  %v656_v3 = vld [vmem:[#allocation10] sm:$0x3] }
 0x179   : > { %733 = vmatmul.mubr.f32.vlgmr.msra.gmra.mrb[16].mxu0 %v568_v63  ;;  %862 = vmatmul.mubr.f32.vlgmr.msra.gmra.mrb[8].mxu1 %v569_v61  ;;  %v571_v10 = vmax.f32 %v423_v2, 0.0  ;;  %v579_v18 = vmax.f32 %v545_v12, 0.0  ;;  %v2932_v4 = vrot.slane %v656_v3, %v312_v46 }
 0x17a   : > { %v572_v8 = vmax.f32 %v425_v5, 0.0  ;;  %v428_v9 = vpop.f32.mrb[4].mxu0  ;;  %867 = vmatprep.mubr.f32.mxu1 %v573_v7  ;;  %v576_v14 = vmax.f32 %v540_v0, 0.0 }
 0x17b   : > { %v429_v11 = vadd.f32 %v428_v9, %v2898_v50  ;;  %v430_v13 = vpop.f32.mrb[5].mxu0 }
 0x17c   : > { %738 = vmatprep.mubr.f32.mxu0 %v572_v8  ;;  %v431_v15 = vadd.f32 %v430_v13, %v2902_v51 }
 0x17d   : > { %739 = vmatmul.mubr.f32.gmra.mrb[18].mxu0 %v571_v10  ;;  %v574_v16 = vmax.f32 %v429_v11, 0.0  ;;  %868 = vmatmul.mubr.f32.gmra.mrb[10].mxu1 %v572_v8 }
 0x17e   : > { %v575_v17 = vmax.f32 %v431_v15, 0.0  ;;  %873 = vmatprep.mubr.f32.mxu1 %v576_v14 }
 0x17f   : > { %v434_v19 = vpop.f32.mrb[6].mxu0  ;;  %v2145_v27 = vpop.f32.mrb[4].mxu1 }
 0x180   : > { %744 = vmatprep.mubr.f32.mxu0 %v575_v17  ;;  %v435_v20 = vadd.f32 %v434_v19, %v2898_v50  ;;  %v436_v21 = vpop.f32.mrb[7].mxu0  ;;  %v555_v29 = vadd.f32 %v2145_v27, %v2904_v52  ;;  %v549_v31 = vpop.f32.mrb[5].mxu1 }
 0x181   : > { %745 = vmatmul.mubr.f32.gmra.mrb[20].mxu0 %v574_v16  ;;  %v437_v22 = vadd.f32 %v436_v21, %v2902_v51  ;;  %874 = vmatmul.mubr.f32.gmra.mrb[12].mxu1 %v575_v17  ;;  %v550_v33 = vadd.f32 %v549_v31, %v2904_v52 }
 0x182   : > { %v577_v23 = vmax.f32 %v435_v20, 0.0  ;;  %879 = vmatprep.mubr.f32.mxu1 %v579_v18  ;;  %v585_v36 = vmax.f32 %v555_v29, 0.0 }
 0x183   : > { %v578_v24 = vmax.f32 %v437_v22, 0.0  ;;  %v440_v25 = vpop.f32.mrb[8].mxu0  ;;  %v582_v37 = vmax.f32 %v550_v33, 0.0  ;;  %v2148_v40 = vpop.f32.mrb[6].mxu1 }
 0x184   : > { %v441_v26 = vadd.f32 %v440_v25, %v2898_v50  ;;  %v442_v28 = vpop.f32.mrb[9].mxu0  ;;  %v559_v42 = vpop.f32.mrb[7].mxu1  ;;  %v565_v54 = vadd.f32 %v2148_v40, %v2904_v52 }
 0x185   : > { %750 = vmatprep.mubr.f32.mxu0 %v578_v24  ;;  %v443_v30 = vadd.f32 %v442_v28, %v2902_v51  ;;  %880 = vmatmul.mubr.f32.gmra.mrb[14].mxu1 %v578_v24  ;;  %v560_v44 = vadd.f32 %v559_v42, %v2904_v52 }
 0x186   : > { %751 = vmatmul.mubr.f32.gmra.mrb[22].mxu0 %v577_v23  ;;  %v580_v32 = vmax.f32 %v441_v26, 0.0  ;;  %885 = vmatprep.mubr.f32.mxu1 %v582_v37  ;;  %v591_v61 = vmax.f32 %v565_v54, 0.0 }
 0x187   : > { %v581_v34 = vmax.f32 %v443_v30, 0.0  ;;  %v446_v35 = vpop.f32.mrb[10].mxu0  ;;  %v588_v56 = vmax.f32 %v560_v44, 0.0 }
 0x188   : > { %v447_v38 = vadd.f32 %v446_v35, %v2898_v50  ;;  %v448_v39 = vpop.f32.mrb[11].mxu0 }
 0x189   : > { %v449_v41 = vadd.f32 %v448_v39, %v2902_v51  ;;  %756 = vmatprep.mubr.f32.mxu0 %v581_v34  ;;  %886 = vmatmul.mubr.f32.gmra.mrb[16].mxu1 %v581_v34 }
 0x18a   : > { %v583_v43 = vmax.f32 %v447_v38, 0.0  ;;  %757 = vmatmul.mubr.f32.gmra.mrb[24].mxu0 %v580_v32  ;;  %891 = vmatprep.mubr.f32.mxu1 %v585_v36 }
 0x18b   : > { %v584_v47 = vmax.f32 %v449_v41, 0.0  ;;  %v452_v49 = vpop.f32.mrb[12].mxu0 }
 0x18c   : > { %v453_v53 = vadd.f32 %v452_v49, %v2898_v50  ;;  %v454_v55 = vpop.f32.mrb[13].mxu0 }
 0x18d   : > { %v455_v57 = vadd.f32 %v454_v55, %v2902_v51  ;;  %762 = vmatprep.mubr.f32.mxu0 %v584_v47  ;;  %892 = vmatmul.mubr.f32.gmra.mrb[18].mxu1 %v584_v47 }
 0x18e   : > { %v586_v58 = vmax.f32 %v453_v53, 0.0  ;;  %763 = vmatmul.mubr.f32.gmra.mrb[26].mxu0 %v583_v43  ;;  %897 = vmatprep.mubr.f32.mxu1 %v588_v56 }
 0x18f   : > { %v587_v59 = vmax.f32 %v455_v57, 0.0  ;;  %v458_v60 = vpop.f32.mrb[14].mxu0 }
 0x190   : > { %v459_v62 = vadd.f32 %v458_v60, %v2898_v50  ;;  %v460_v63 = vpop.f32.mrb[15].mxu0  ;;  %v2936_v50 = vrot.slane %v656_v3, %v316_v48 }
 0x191   : > { %v461_v1 = vadd.f32 %v460_v63, %v2902_v51  ;;  %768 = vmatprep.mubr.f32.mxu0 %v587_v59  ;;  %898 = vmatmul.mubr.f32.gmra.mrb[20].mxu1 %v587_v59 }
 0x192   : > { %v589_v52 = vmax.f32 %v459_v62, 0.0  ;;  %769 = vmatmul.mubr.f32.gmra.mrb[28].mxu0 %v586_v58  ;;  %903 = vmatprep.mubr.f32.mxu1 %v591_v61 }
 0x193   : > { %v590_v2 = vmax.f32 %v461_v1, 0.0 }
 0x195   : > { %774 = vmatprep.mubr.f32.mxu0 %v590_v2  ;;  %904 = vmatmul.mubr.f32.gmra.mrb[22].mxu1 %v590_v2 }
 0x196   : > { %775 = vmatmul.mubr.f32.gmra.mrb[30].mxu0 %v589_v52 }
 0x24c   : > { %v734_v5 = vpop.f32.mrb[16].mxu0  ;;  %v863_v6 = vpop.f32.mrb[8].mxu1 }
 0x24d   : > { %v735_v51 = vadd.f32 %v734_v5, %v2932_v4  ;;  %v736_v7 = vpop.f32.mrb[17].mxu0  ;;  %v864_v0 = vadd.f32 %v863_v6, %v2932_v4  ;;  %v865_v9 = vpop.f32.mrb[9].mxu1 }
 0x24e   : > { %v737_v8 = vadd.f32 %v736_v7, %v2936_v50  ;;  %v866_v11 = vadd.f32 %v865_v9, %v2936_v50 }
 0x24f   : > { %v781_v10 = vmax.f32 %v735_v51, 0.0  ;;  %v910_v12 = vmax.f32 %v864_v0, 0.0 }
 0x250   : > { %v782_v46 = vmax.f32 %v737_v8, 0.0  ;;  %v740_v13 = vpop.f32.mrb[18].mxu0  ;;  %v911_v14 = vmax.f32 %v866_v11, 0.0  ;;  %v869_v48 = vpop.f32.mrb[10].mxu1 }
 0x251   : > { %v741_v45 = vadd.f32 %v740_v13, %v2932_v4  ;;  %v742_v15 = vpop.f32.mrb[19].mxu0  ;;  %v870_v16 = vadd.f32 %v869_v48, %v2932_v4  ;;  %v871_v18 = vpop.f32.mrb[11].mxu1  ;;  %v926_v19 = vadd.f32 %v910_v12, %v781_v10 }
 0x252   : > { %v743_v17 = vadd.f32 %v742_v15, %v2936_v50  ;;  %v872_v21 = vadd.f32 %v871_v18, %v2936_v50  ;;  %v927_v22 = vadd.f32 %v911_v14, %v782_v46 }
 0x253   : > { %v783_v20 = vmax.f32 %v741_v45, 0.0  ;;  %v912_v23 = vmax.f32 %v870_v16, 0.0  ;;  %v942_v25 = vmul.f32 0.5, %v926_v19 }
 0x254   : > { %v784_v24 = vmax.f32 %v743_v17, 0.0  ;;  %v746_v26 = vpop.f32.mrb[20].mxu0  ;;  %v913_v27 = vmax.f32 %v872_v21, 0.0  ;;  %v875_v29 = vpop.f32.mrb[12].mxu1  ;;  %v943_v1 = vmul.f32 0.5, %v927_v22 }
 0x255   : > { %v747_v28 = vadd.f32 %v746_v26, %v2932_v4  ;;  %v748_v30 = vpop.f32.mrb[21].mxu0  ;;  %958 = vxpose.xlu0.b32.start.end [1/1] (short) %v942_v25, 128  ;;  %v928_v31 = vadd.f32 %v912_v23, %v783_v20  ;;  %v876_v32 = vadd.f32 %v875_v29, %v2932_v4  ;;  %v877_v34 = vpop.f32.mrb[13].mxu1 }
 0x256   : > { %v749_v33 = vadd.f32 %v748_v30, %v2936_v50  ;;  %v929_v35 = vadd.f32 %v913_v27, %v784_v24  ;;  %v878_v37 = vadd.f32 %v877_v34, %v2936_v50 }
 0x257   : > { %v785_v36 = vmax.f32 %v747_v28, 0.0  ;;  %v944_v38 = vmul.f32 0.5, %v928_v31  ;;  %v914_v39 = vmax.f32 %v876_v32, 0.0 }
 0x258   : > { %v786_v40 = vmax.f32 %v749_v33, 0.0  ;;  %v915_v41 = vmax.f32 %v878_v37, 0.0  ;;  %v881_v47 = vpop.f32.mrb[14].mxu1  ;;  %v945_v7 = vmul.f32 0.5, %v929_v35 }
 0x259   : > { %1055 = vxpose.xlu1.b32.start.end [1/1] (short) %v944_v38, 128  ;;  %v2950_v42 = vadd.f32 %v914_v39, %v785_v36  ;;  %v752_v44 = vpop.f32.mrb[22].mxu0  ;;  %v882_v53 = vadd.f32 %v881_v47, %v2932_v4  ;;  %v883_v57 = vpop.f32.mrb[15].mxu1 }
 0x25a   : > { %v2952_v43 = vadd.f32 %v915_v41, %v786_v40  ;;  %v753_v49 = vadd.f32 %v752_v44, %v2932_v4  ;;  %v754_v56 = vpop.f32.mrb[23].mxu0  ;;  %v884_v60 = vadd.f32 %v883_v57, %v2936_v50 }
 0x25b   : > { %v916_v55 = vmax.f32 %v882_v53, 0.0  ;;  %v755_v59 = vadd.f32 %v754_v56, %v2936_v50 }
 0x25c   : > { %v787_v54 = vmax.f32 %v753_v49, 0.0  ;;  %v917_v62 = vmax.f32 %v884_v60, 0.0  ;;  %v887_v2 = vpop.f32.mrb[16].mxu1 }
 0x25d   : > { %v788_v61 = vmax.f32 %v755_v59, 0.0  ;;  %v758_v52 = vpop.f32.mrb[24].mxu0  ;;  %v888_v5 = vadd.f32 %v887_v2, %v2932_v4  ;;  %v889_v6 = vpop.f32.mrb[17].mxu1 }
 0x25e   : > { %v2956_v58 = vadd.f32 %v916_v55, %v787_v54  ;;  %v759_v3 = vadd.f32 %v758_v52, %v2932_v4  ;;  %v760_v51 = vpop.f32.mrb[25].mxu0  ;;  %v890_v8 = vadd.f32 %v889_v6, %v2936_v50 }
 0x25f   : > { %v2960_v63 = vadd.f32 %v917_v62, %v788_v61  ;;  %v761_v0 = vadd.f32 %v760_v51, %v2936_v50  ;;  %v918_v10 = vmax.f32 %v888_v5, 0.0 }
 0x260   : > { %v789_v9 = vmax.f32 %v759_v3, 0.0  ;;  %v919_v12 = vmax.f32 %v890_v8, 0.0  ;;  %v893_v13 = vpop.f32.mrb[18].mxu1 }
 0x261   : > { %v790_v11 = vmax.f32 %v761_v0, 0.0  ;;  %v764_v46 = vpop.f32.mrb[26].mxu0  ;;  %v894_v48 = vadd.f32 %v893_v13, %v2932_v4  ;;  %v895_v16 = vpop.f32.mrb[19].mxu1 }
 0x262   : > { %v2966_v14 = vadd.f32 %v918_v10, %v789_v9  ;;  %v765_v45 = vadd.f32 %v764_v46, %v2932_v4  ;;  %v766_v15 = vpop.f32.mrb[27].mxu0  ;;  %v896_v19 = vadd.f32 %v895_v16, %v2936_v50 }
 0x263   : > { %v2970_v17 = vadd.f32 %v919_v12, %v790_v11  ;;  %v767_v18 = vadd.f32 %v766_v15, %v2936_v50  ;;  %v920_v21 = vmax.f32 %v894_v48, 0.0 }
 0x264   : > { %v791_v20 = vmax.f32 %v765_v45, 0.0  ;;  %v921_v23 = vmax.f32 %v896_v19, 0.0  ;;  %v899_v25 = vpop.f32.mrb[20].mxu1 }
 0x265   : > { %v792_v22 = vmax.f32 %v767_v18, 0.0  ;;  %v770_v24 = vpop.f32.mrb[28].mxu0  ;;  %v900_v28 = vadd.f32 %v899_v25, %v2932_v4  ;;  %v901_v30 = vpop.f32.mrb[21].mxu1 }
 0x266   : > { %v2974_v26 = vadd.f32 %v920_v21, %v791_v20  ;;  %v771_v27 = vadd.f32 %v770_v24, %v2932_v4  ;;  %v772_v29 = vpop.f32.mrb[29].mxu0  ;;  %v902_v33 = vadd.f32 %v901_v30, %v2936_v50  ;;  %v948_v21 = vmul.f32 0.5, %v2956_v58 }
 0x267   : > { %v2978_v31 = vadd.f32 %v921_v23, %v792_v22  ;;  %v773_v32 = vadd.f32 %v772_v29, %v2936_v50  ;;  %v922_v35 = vmax.f32 %v900_v28, 0.0  ;;  %v949_v24 = vmul.f32 0.5, %v2960_v63 }
 0x268   : > { %v793_v34 = vmax.f32 %v771_v27, 0.0  ;;  %v923_v37 = vmax.f32 %v902_v33, 0.0  ;;  %v905_v39 = vpop.f32.mrb[22].mxu1 }
 0x269   : > { %v794_v36 = vmax.f32 %v773_v32, 0.0  ;;  %v776_v38 = vpop.f32.mrb[30].mxu0  ;;  %v906_v44 = vadd.f32 %v905_v39, %v2932_v4  ;;  %v907_v49 = vpop.f32.mrb[23].mxu1 }
 0x26a   : > { %v2982_v40 = vadd.f32 %v922_v35, %v793_v34  ;;  %v777_v41 = vadd.f32 %v776_v38, %v2932_v4  ;;  %v778_v47 = vpop.f32.mrb[31].mxu0  ;;  %v908_v55 = vadd.f32 %v907_v49, %v2936_v50  ;;  %v947_v4 = vmul.f32 0.5, %v2952_v43 }
 0x26b   : > { %v2986_v53 = vadd.f32 %v923_v37, %v794_v36  ;;  %v779_v54 = vadd.f32 %v778_v47, %v2936_v50  ;;  %v924_v57 = vmax.f32 %v906_v44, 0.0 }
 0x26c   : > { %v795_v56 = vmax.f32 %v777_v41, 0.0  ;;  %v925_v60 = vmax.f32 %v908_v55, 0.0 }
 0x26d   : > { %v796_v59 = vmax.f32 %v779_v54, 0.0 }
 0x26e   : > { %v2990_v61 = vadd.f32 %v924_v57, %v795_v56 }
 0x26f   : > { %v2992_v62 = vadd.f32 %v925_v60, %v796_v59 }
 0x292   : > { %990 = vxpose.xlu0.b32.start.end [1/1] (short) %v943_v1, 128  ;;  %v946_v1 = vmul.f32 0.5, %v2950_v42 }
 0x296   : > { %1087 = vxpose.xlu1.b32.start.end [1/1] (short) %v945_v7, 128 }
 0x2cf   : > { %1152 = vxpose.xlu0.b32.start.end [1/1] (short) %v946_v1, 128 }
 0x2d3   : > { %1184 = vxpose.xlu1.b32.start.end [1/1] (short) %v947_v4, 128 }
 0x2d5   : > { %v974_v52 = vpop.trf.xlu0 }
 0x2d6   : > { %1023 = vst.msk [vmem:[%s2997_s26] sm:$0xff] %vm1022_vm1, %v974_v52 }
 0x2d9   : > { %v1071_v50 = vpop.trf.xlu1  ;;  %v975_v42 = vpop.trf.xlu0 }
 0x2da   : > { %1893 = vst.msk [vmem:[%s2997_s26 + $0x100] sm:$0xff] %vm1022_vm1, %v1071_v50  ;;  %1024 = vst.msk [vmem:[%s2997_s26 + $0x8] sm:$0xff] %vm1022_vm1, %v975_v42 }
 0x2dd   : > { %v1072_v43 = vpop.trf.xlu1  ;;  %v976_v2 = vpop.trf.xlu0 }
 0x2de   : > { %1894 = vst.msk [vmem:[%s2997_s26 + $0x108] sm:$0xff] %vm1022_vm1, %v1072_v43  ;;  %1025 = vst.msk [vmem:[%s2997_s26 + $0x10] sm:$0xff] %vm1022_vm1, %v976_v2 }
 0x2e1   : > { %v1073_v3 = vpop.trf.xlu1  ;;  %v977_v5 = vpop.trf.xlu0 }
 0x2e2   : > { %1895 = vst.msk [vmem:[%s2997_s26 + $0x110] sm:$0xff] %vm1022_vm1, %v1073_v3  ;;  %1026 = vst.msk [vmem:[%s2997_s26 + $0x18] sm:$0xff] %vm1022_vm1, %v977_v5  ;;  %v950_v3 = vmul.f32 0.5, %v2966_v14 }
 0x2e5   : > { %v1074_v51 = vpop.trf.xlu1  ;;  %v978_v6 = vpop.trf.xlu0 }
 0x2e6   : > { %1896 = vst.msk [vmem:[%s2997_s26 + $0x118] sm:$0xff] %vm1022_vm1, %v1074_v51  ;;  %1027 = vst.msk [vmem:[%s2997_s26 + $0x20] sm:$0xff] %vm1022_vm1, %v978_v6  ;;  %v951_v6 = vmul.f32 0.5, %v2970_v17 }
 0x2e9   : > { %v1075_v7 = vpop.trf.xlu1  ;;  %v979_v0 = vpop.trf.xlu0 }
 0x2ea   : > { %1897 = vst.msk [vmem:[%s2997_s26 + $0x120] sm:$0xff] %vm1022_vm1, %v1075_v7  ;;  %1028 = vst.msk [vmem:[%s2997_s26 + $0x28] sm:$0xff] %vm1022_vm1, %v979_v0 }
 0x2ed   : > { %v1076_v8 = vpop.trf.xlu1  ;;  %v980_v9 = vpop.trf.xlu0 }
 0x2ee   : > { %1898 = vst.msk [vmem:[%s2997_s26 + $0x128] sm:$0xff] %vm1022_vm1, %v1076_v8  ;;  %1029 = vst.msk [vmem:[%s2997_s26 + $0x30] sm:$0xff] %vm1022_vm1, %v980_v9 }
 0x2f1   : > { %v1077_v10 = vpop.trf.xlu1  ;;  %v981_v11 = vpop.trf.xlu0 }
 0x2f2   : > { %1899 = vst.msk [vmem:[%s2997_s26 + $0x130] sm:$0xff] %vm1022_vm1, %v1077_v10  ;;  %1030 = vst.msk [vmem:[%s2997_s26 + $0x38] sm:$0xff] %vm1022_vm1, %v981_v11 }
 0x2f5   : > { %v1078_v12 = vpop.trf.xlu1  ;;  %v982_v46 = vpop.trf.xlu0 }
 0x2f6   : > { %1900 = vst.msk [vmem:[%s2997_s26 + $0x138] sm:$0xff] %vm1022_vm1, %v1078_v12  ;;  %1031 = vst.msk [vmem:[%s2997_s26 + $0x40] sm:$0xff] %vm1022_vm1, %v982_v46 }
 0x2f9   : > { %v1079_v13 = vpop.trf.xlu1  ;;  %v983_v45 = vpop.trf.xlu0 }
 0x2fa   : > { %1901 = vst.msk [vmem:[%s2997_s26 + $0x140] sm:$0xff] %vm1022_vm1, %v1079_v13  ;;  %1032 = vst.msk [vmem:[%s2997_s26 + $0x48] sm:$0xff] %vm1022_vm1, %v983_v45 }
 0x2fd   : > { %v1080_v48 = vpop.trf.xlu1  ;;  %v984_v15 = vpop.trf.xlu0 }
 0x2fe   : > { %1902 = vst.msk [vmem:[%s2997_s26 + $0x148] sm:$0xff] %vm1022_vm1, %v1080_v48  ;;  %1033 = vst.msk [vmem:[%s2997_s26 + $0x50] sm:$0xff] %vm1022_vm1, %v984_v15 }
 0x301   : > { %v1081_v16 = vpop.trf.xlu1  ;;  %v985_v18 = vpop.trf.xlu0 }
 0x302   : > { %1903 = vst.msk [vmem:[%s2997_s26 + $0x150] sm:$0xff] %vm1022_vm1, %v1081_v16  ;;  %1034 = vst.msk [vmem:[%s2997_s26 + $0x58] sm:$0xff] %vm1022_vm1, %v985_v18 }
 0x305   : > { %v1082_v19 = vpop.trf.xlu1  ;;  %v986_v20 = vpop.trf.xlu0 }
 0x306   : > { %1904 = vst.msk [vmem:[%s2997_s26 + $0x158] sm:$0xff] %vm1022_vm1, %v1082_v19  ;;  %1035 = vst.msk [vmem:[%s2997_s26 + $0x60] sm:$0xff] %vm1022_vm1, %v986_v20 }
 0x309   : > { %v1083_v22 = vpop.trf.xlu1  ;;  %v987_v23 = vpop.trf.xlu0 }
 0x30a   : > { %1905 = vst.msk [vmem:[%s2997_s26 + $0x160] sm:$0xff] %vm1022_vm1, %v1083_v22  ;;  %1036 = vst.msk [vmem:[%s2997_s26 + $0x68] sm:$0xff] %vm1022_vm1, %v987_v23 }
 0x30d   : > { %v1084_v25 = vpop.trf.xlu1  ;;  %v988_v27 = vpop.trf.xlu0  ;;  %1249 = vxpose.xlu0.b32.start.end [1/1] (short) %v948_v21, 128 }
 0x30e   : > { %1906 = vst.msk [vmem:[%s2997_s26 + $0x168] sm:$0xff] %vm1022_vm1, %v1084_v25  ;;  %1037 = vst.msk [vmem:[%s2997_s26 + $0x70] sm:$0xff] %vm1022_vm1, %v988_v27 }
 0x311   : > { %v1085_v58 = vpop.trf.xlu1  ;;  %v989_v28 = vpop.trf.xlu0  ;;  %1281 = vxpose.xlu1.b32.start.end [1/1] (short) %v949_v24, 128 }
 0x312   : > { %1907 = vst.msk [vmem:[%s2997_s26 + $0x170] sm:$0xff] %vm1022_vm1, %v1085_v58  ;;  %1038 = vst.msk [vmem:[%s2997_s26 + $0x78] sm:$0xff] %vm1022_vm1, %v989_v28 }
 0x315   : > { %v1086_v63 = vpop.trf.xlu1  ;;  %v1006_v29 = vpop.trf.xlu0 }
 0x316   : > { %1908 = vst.msk [vmem:[%s2997_s26 + $0x178] sm:$0xff] %vm1022_vm1, %v1086_v63  ;;  %1039 = vst.msk [vmem:[%s2997_s26 + $0x80] sm:$0xff] %vm1022_vm1, %v1006_v29 }
 0x319   : > { %v1103_v30 = vpop.trf.xlu1  ;;  %v1007_v32 = vpop.trf.xlu0 }
 0x31a   : > { %1909 = vst.msk [vmem:[%s2997_s26 + $0x180] sm:$0xff] %vm1022_vm1, %v1103_v30  ;;  %1040 = vst.msk [vmem:[%s2997_s26 + $0x88] sm:$0xff] %vm1022_vm1, %v1007_v32 }
 0x31d   : > { %v1104_v33 = vpop.trf.xlu1  ;;  %v1008_v34 = vpop.trf.xlu0 }
 0x31e   : > { %1910 = vst.msk [vmem:[%s2997_s26 + $0x188] sm:$0xff] %vm1022_vm1, %v1104_v33  ;;  %1041 = vst.msk [vmem:[%s2997_s26 + $0x90] sm:$0xff] %vm1022_vm1, %v1008_v34  ;;  %v952_v33 = vmul.f32 0.5, %v2974_v26 }
 0x321   : > { %v1105_v35 = vpop.trf.xlu1  ;;  %v1009_v36 = vpop.trf.xlu0 }
 0x322   : > { %1911 = vst.msk [vmem:[%s2997_s26 + $0x190] sm:$0xff] %vm1022_vm1, %v1105_v35  ;;  %1042 = vst.msk [vmem:[%s2997_s26 + $0x98] sm:$0xff] %vm1022_vm1, %v1009_v36  ;;  %v953_v36 = vmul.f32 0.5, %v2978_v31 }
 0x325   : > { %v1106_v37 = vpop.trf.xlu1  ;;  %v1010_v38 = vpop.trf.xlu0 }
 0x326   : > { %1912 = vst.msk [vmem:[%s2997_s26 + $0x198] sm:$0xff] %vm1022_vm1, %v1106_v37  ;;  %1043 = vst.msk [vmem:[%s2997_s26 + $0xa0] sm:$0xff] %vm1022_vm1, %v1010_v38 }
 0x329   : > { %v1107_v39 = vpop.trf.xlu1  ;;  %v1011_v41 = vpop.trf.xlu0 }
 0x32a   : > { %1913 = vst.msk [vmem:[%s2997_s26 + $0x1a0] sm:$0xff] %vm1022_vm1, %v1107_v39  ;;  %1044 = vst.msk [vmem:[%s2997_s26 + $0xa8] sm:$0xff] %vm1022_vm1, %v1011_v41 }
 0x32d   : > { %v1108_v44 = vpop.trf.xlu1  ;;  %v1012_v47 = vpop.trf.xlu0 }
 0x32e   : > { %1914 = vst.msk [vmem:[%s2997_s26 + $0x1a8] sm:$0xff] %vm1022_vm1, %v1108_v44  ;;  %1045 = vst.msk [vmem:[%s2997_s26 + $0xb0] sm:$0xff] %vm1022_vm1, %v1012_v47 }
 0x331   : > { %v1109_v49 = vpop.trf.xlu1  ;;  %v1013_v54 = vpop.trf.xlu0 }
 0x332   : > { %1915 = vst.msk [vmem:[%s2997_s26 + $0x1b0] sm:$0xff] %vm1022_vm1, %v1109_v49  ;;  %1046 = vst.msk [vmem:[%s2997_s26 + $0xb8] sm:$0xff] %vm1022_vm1, %v1013_v54 }
 0x335   : > { %v1110_v55 = vpop.trf.xlu1  ;;  %v1014_v56 = vpop.trf.xlu0 }
 0x336   : > { %1916 = vst.msk [vmem:[%s2997_s26 + $0x1b8] sm:$0xff] %vm1022_vm1, %v1110_v55  ;;  %1047 = vst.msk [vmem:[%s2997_s26 + $0xc0] sm:$0xff] %vm1022_vm1, %v1014_v56 }
 0x339   : > { %v1111_v57 = vpop.trf.xlu1  ;;  %v1015_v59 = vpop.trf.xlu0 }
 0x33a   : > { %1917 = vst.msk [vmem:[%s2997_s26 + $0x1c0] sm:$0xff] %vm1022_vm1, %v1111_v57  ;;  %1048 = vst.msk [vmem:[%s2997_s26 + $0xc8] sm:$0xff] %vm1022_vm1, %v1015_v59 }
 0x33d   : > { %v1112_v60 = vpop.trf.xlu1  ;;  %v1016_v1 = vpop.trf.xlu0 }
 0x33e   : > { %1918 = vst.msk [vmem:[%s2997_s26 + $0x1c8] sm:$0xff] %vm1022_vm1, %v1112_v60  ;;  %1049 = vst.msk [vmem:[%s2997_s26 + $0xd0] sm:$0xff] %vm1022_vm1, %v1016_v1 }
 0x341   : > { %v1113_v4 = vpop.trf.xlu1  ;;  %v1017_v52 = vpop.trf.xlu0 }
 0x342   : > { %1919 = vst.msk [vmem:[%s2997_s26 + $0x1d0] sm:$0xff] %vm1022_vm1, %v1113_v4  ;;  %1050 = vst.msk [vmem:[%s2997_s26 + $0xd8] sm:$0xff] %vm1022_vm1, %v1017_v52 }
 0x345   : > { %v1114_v50 = vpop.trf.xlu1  ;;  %v1018_v42 = vpop.trf.xlu0 }
 0x346   : > { %1920 = vst.msk [vmem:[%s2997_s26 + $0x1d8] sm:$0xff] %vm1022_vm1, %v1114_v50  ;;  %1051 = vst.msk [vmem:[%s2997_s26 + $0xe0] sm:$0xff] %vm1022_vm1, %v1018_v42 }
 0x349   : > { %v1115_v43 = vpop.trf.xlu1  ;;  %v1019_v2 = vpop.trf.xlu0 }
 0x34a   : > { %1921 = vst.msk [vmem:[%s2997_s26 + $0x1e0] sm:$0xff] %vm1022_vm1, %v1115_v43  ;;  %1052 = vst.msk [vmem:[%s2997_s26 + $0xe8] sm:$0xff] %vm1022_vm1, %v1019_v2 }
 0x34d   : > { %v1116_v5 = vpop.trf.xlu1  ;;  %v1020_v51 = vpop.trf.xlu0  ;;  %1346 = vxpose.xlu0.b32.start.end [1/1] (short) %v950_v3, 128 }
 0x34e   : > { %1922 = vst.msk [vmem:[%s2997_s26 + $0x1e8] sm:$0xff] %vm1022_vm1, %v1116_v5  ;;  %1053 = vst.msk [vmem:[%s2997_s26 + $0xf0] sm:$0xff] %vm1022_vm1, %v1020_v51 }
 0x351   : > { %v1117_v7 = vpop.trf.xlu1  ;;  %1378 = vxpose.xlu1.b32.start.end [1/1] (short) %v951_v6, 128  ;;  %v1021_v0 = vpop.trf.xlu0 }
 0x352   : > { %1923 = vst.msk [vmem:[%s2997_s26 + $0x1f0] sm:$0xff] %vm1022_vm1, %v1117_v7  ;;  %1054 = vst.msk [vmem:[%s2997_s26 + $0xf8] sm:$0xff] %vm1022_vm1, %v1021_v0 }
 0x355   : > { %v1118_v14 = vpop.trf.xlu1  ;;  %v1168_v8 = vpop.trf.xlu0 }
 0x356   : > { %1924 = vst.msk [vmem:[%s2997_s26 + $0x1f8] sm:$0xff] %vm1022_vm1, %v1118_v14  ;;  %1925 = vst.msk [vmem:[%s2997_s26 + $0x200] sm:$0xff] %vm1022_vm1, %v1168_v8 }
 0x359   : > { %v1200_v17 = vpop.trf.xlu1  ;;  %v1169_v9 = vpop.trf.xlu0 }
 0x35a   : > { %1941 = vst.msk [vmem:[%s2997_s26 + $0x280] sm:$0xff] %vm1022_vm1, %v1200_v17  ;;  %1926 = vst.msk [vmem:[%s2997_s26 + $0x208] sm:$0xff] %vm1022_vm1, %v1169_v9  ;;  %v954_v17 = vmul.f32 0.5, %v2982_v40 }
 0x35d   : > { %v1201_v10 = vpop.trf.xlu1  ;;  %v1170_v11 = vpop.trf.xlu0 }
 0x35e   : > { %1942 = vst.msk [vmem:[%s2997_s26 + $0x288] sm:$0xff] %vm1022_vm1, %v1201_v10  ;;  %1927 = vst.msk [vmem:[%s2997_s26 + $0x210] sm:$0xff] %vm1022_vm1, %v1170_v11  ;;  %v955_v11 = vmul.f32 0.5, %v2986_v53 }
 0x361   : > { %v1202_v12 = vpop.trf.xlu1  ;;  %v1171_v46 = vpop.trf.xlu0 }
 0x362   : > { %1943 = vst.msk [vmem:[%s2997_s26 + $0x290] sm:$0xff] %vm1022_vm1, %v1202_v12  ;;  %1928 = vst.msk [vmem:[%s2997_s26 + $0x218] sm:$0xff] %vm1022_vm1, %v1171_v46 }
 0x365   : > { %v1203_v13 = vpop.trf.xlu1  ;;  %v1172_v45 = vpop.trf.xlu0 }
 0x366   : > { %1944 = vst.msk [vmem:[%s2997_s26 + $0x298] sm:$0xff] %vm1022_vm1, %v1203_v13  ;;  %1929 = vst.msk [vmem:[%s2997_s26 + $0x220] sm:$0xff] %vm1022_vm1, %v1172_v45 }
 0x369   : > { %v1204_v48 = vpop.trf.xlu1  ;;  %v1173_v15 = vpop.trf.xlu0 }
 0x36a   : > { %1945 = vst.msk [vmem:[%s2997_s26 + $0x2a0] sm:$0xff] %vm1022_vm1, %v1204_v48  ;;  %1930 = vst.msk [vmem:[%s2997_s26 + $0x228] sm:$0xff] %vm1022_vm1, %v1173_v15 }
 0x36d   : > { %v1205_v16 = vpop.trf.xlu1  ;;  %v1174_v18 = vpop.trf.xlu0 }
 0x36e   : > { %1946 = vst.msk [vmem:[%s2997_s26 + $0x2a8] sm:$0xff] %vm1022_vm1, %v1205_v16  ;;  %1931 = vst.msk [vmem:[%s2997_s26 + $0x230] sm:$0xff] %vm1022_vm1, %v1174_v18 }
 0x371   : > { %v1206_v19 = vpop.trf.xlu1  ;;  %v1175_v20 = vpop.trf.xlu0 }
 0x372   : > { %1947 = vst.msk [vmem:[%s2997_s26 + $0x2b0] sm:$0xff] %vm1022_vm1, %v1206_v19  ;;  %1932 = vst.msk [vmem:[%s2997_s26 + $0x238] sm:$0xff] %vm1022_vm1, %v1175_v20 }
 0x375   : > { %v1207_v21 = vpop.trf.xlu1  ;;  %v1176_v22 = vpop.trf.xlu0 }
 0x376   : > { %1948 = vst.msk [vmem:[%s2997_s26 + $0x2b8] sm:$0xff] %vm1022_vm1, %v1207_v21  ;;  %1933 = vst.msk [vmem:[%s2997_s26 + $0x240] sm:$0xff] %vm1022_vm1, %v1176_v22 }
 0x379   : > { %v1208_v23 = vpop.trf.xlu1  ;;  %v1177_v24 = vpop.trf.xlu0 }
 0x37a   : > { %1949 = vst.msk [vmem:[%s2997_s26 + $0x2c0] sm:$0xff] %vm1022_vm1, %v1208_v23  ;;  %1934 = vst.msk [vmem:[%s2997_s26 + $0x248] sm:$0xff] %vm1022_vm1, %v1177_v24 }
 0x37d   : > { %v1209_v25 = vpop.trf.xlu1  ;;  %v1178_v27 = vpop.trf.xlu0 }
 0x37e   : > { %1950 = vst.msk [vmem:[%s2997_s26 + $0x2c8] sm:$0xff] %vm1022_vm1, %v1209_v25  ;;  %1935 = vst.msk [vmem:[%s2997_s26 + $0x250] sm:$0xff] %vm1022_vm1, %v1178_v27 }
 0x381   : > { %v1210_v58 = vpop.trf.xlu1  ;;  %v1179_v28 = vpop.trf.xlu0 }
 0x382   : > { %1951 = vst.msk [vmem:[%s2997_s26 + $0x2d0] sm:$0xff] %vm1022_vm1, %v1210_v58  ;;  %1936 = vst.msk [vmem:[%s2997_s26 + $0x258] sm:$0xff] %vm1022_vm1, %v1179_v28 }
 0x385   : > { %v1211_v63 = vpop.trf.xlu1  ;;  %v1180_v29 = vpop.trf.xlu0 }
 0x386   : > { %1952 = vst.msk [vmem:[%s2997_s26 + $0x2d8] sm:$0xff] %vm1022_vm1, %v1211_v63  ;;  %1937 = vst.msk [vmem:[%s2997_s26 + $0x260] sm:$0xff] %vm1022_vm1, %v1180_v29 }
 0x389   : > { %v1212_v30 = vpop.trf.xlu1  ;;  %v1181_v32 = vpop.trf.xlu0 }
 0x38a   : > { %1953 = vst.msk [vmem:[%s2997_s26 + $0x2e0] sm:$0xff] %vm1022_vm1, %v1212_v30  ;;  %1938 = vst.msk [vmem:[%s2997_s26 + $0x268] sm:$0xff] %vm1022_vm1, %v1181_v32 }
 0x38d   : > { %v1213_v34 = vpop.trf.xlu1  ;;  %v1182_v35 = vpop.trf.xlu0  ;;  %1443 = vxpose.xlu0.b32.start.end [1/1] (short) %v952_v33, 128 }
 0x38e   : > { %1954 = vst.msk [vmem:[%s2997_s26 + $0x2e8] sm:$0xff] %vm1022_vm1, %v1213_v34  ;;  %1939 = vst.msk [vmem:[%s2997_s26 + $0x270] sm:$0xff] %vm1022_vm1, %v1182_v35 }
 0x391   : > { %v1214_v37 = vpop.trf.xlu1  ;;  %1475 = vxpose.xlu1.b32.start.end [1/1] (short) %v953_v36, 128  ;;  %v1183_v38 = vpop.trf.xlu0 }
 0x392   : > { %1955 = vst.msk [vmem:[%s2997_s26 + $0x2f0] sm:$0xff] %vm1022_vm1, %v1214_v37  ;;  %1940 = vst.msk [vmem:[%s2997_s26 + $0x278] sm:$0xff] %vm1022_vm1, %v1183_v38 }
 0x395   : > { %v1215_v26 = vpop.trf.xlu1  ;;  %v1265_v39 = vpop.trf.xlu0 }
 0x396   : > { %1956 = vst.msk [vmem:[%s2997_s26 + $0x2f8] sm:$0xff] %vm1022_vm1, %v1215_v26  ;;  %1957 = vst.msk [vmem:[%s2997_s26 + $0x300] sm:$0xff] %vm1022_vm1, %v1265_v39  ;;  %v956_v26 = vmul.f32 0.5, %v2990_v61 }
 0x399   : > { %v1297_v31 = vpop.trf.xlu1  ;;  %v1266_v41 = vpop.trf.xlu0 }
 0x39a   : > { %1973 = vst.msk [vmem:[%s2997_s26 + $0x380] sm:$0xff] %vm1022_vm1, %v1297_v31  ;;  %1958 = vst.msk [vmem:[%s2997_s26 + $0x308] sm:$0xff] %vm1022_vm1, %v1266_v41  ;;  %v957_v41 = vmul.f32 0.5, %v2992_v62 }
 0x39d   : > { %v1298_v44 = vpop.trf.xlu1  ;;  %v1267_v47 = vpop.trf.xlu0 }
 0x39e   : > { %1974 = vst.msk [vmem:[%s2997_s26 + $0x388] sm:$0xff] %vm1022_vm1, %v1298_v44  ;;  %1959 = vst.msk [vmem:[%s2997_s26 + $0x310] sm:$0xff] %vm1022_vm1, %v1267_v47 }
 0x3a1   : > { %v1299_v49 = vpop.trf.xlu1  ;;  %v1268_v54 = vpop.trf.xlu0 }
 0x3a2   : > { %1975 = vst.msk [vmem:[%s2997_s26 + $0x390] sm:$0xff] %vm1022_vm1, %v1299_v49  ;;  %1960 = vst.msk [vmem:[%s2997_s26 + $0x318] sm:$0xff] %vm1022_vm1, %v1268_v54 }
 0x3a5   : > { %v1300_v55 = vpop.trf.xlu1  ;;  %v1269_v56 = vpop.trf.xlu0 }
 0x3a6   : > { %1976 = vst.msk [vmem:[%s2997_s26 + $0x398] sm:$0xff] %vm1022_vm1, %v1300_v55  ;;  %1961 = vst.msk [vmem:[%s2997_s26 + $0x320] sm:$0xff] %vm1022_vm1, %v1269_v56 }
 0x3a9   : > { %v1301_v57 = vpop.trf.xlu1  ;;  %v1270_v59 = vpop.trf.xlu0 }
 0x3aa   : > { %1977 = vst.msk [vmem:[%s2997_s26 + $0x3a0] sm:$0xff] %vm1022_vm1, %v1301_v57  ;;  %1962 = vst.msk [vmem:[%s2997_s26 + $0x328] sm:$0xff] %vm1022_vm1, %v1270_v59 }
 0x3ad   : > { %v1302_v60 = vpop.trf.xlu1  ;;  %v1271_v1 = vpop.trf.xlu0 }
 0x3ae   : > { %1978 = vst.msk [vmem:[%s2997_s26 + $0x3a8] sm:$0xff] %vm1022_vm1, %v1302_v60  ;;  %1963 = vst.msk [vmem:[%s2997_s26 + $0x330] sm:$0xff] %vm1022_vm1, %v1271_v1 }
 0x3b1   : > { %v1303_v4 = vpop.trf.xlu1  ;;  %v1272_v52 = vpop.trf.xlu0 }
 0x3b2   : > { %1979 = vst.msk [vmem:[%s2997_s26 + $0x3b0] sm:$0xff] %vm1022_vm1, %v1303_v4  ;;  %1964 = vst.msk [vmem:[%s2997_s26 + $0x338] sm:$0xff] %vm1022_vm1, %v1272_v52 }
 0x3b5   : > { %v1304_v50 = vpop.trf.xlu1  ;;  %v1273_v42 = vpop.trf.xlu0 }
 0x3b6   : > { %1980 = vst.msk [vmem:[%s2997_s26 + $0x3b8] sm:$0xff] %vm1022_vm1, %v1304_v50  ;;  %1965 = vst.msk [vmem:[%s2997_s26 + $0x340] sm:$0xff] %vm1022_vm1, %v1273_v42 }
 0x3b9   : > { %v1305_v43 = vpop.trf.xlu1  ;;  %v1274_v2 = vpop.trf.xlu0 }
 0x3ba   : > { %1981 = vst.msk [vmem:[%s2997_s26 + $0x3c0] sm:$0xff] %vm1022_vm1, %v1305_v43  ;;  %1966 = vst.msk [vmem:[%s2997_s26 + $0x348] sm:$0xff] %vm1022_vm1, %v1274_v2 }
 0x3bd   : > { %v1306_v3 = vpop.trf.xlu1  ;;  %v1275_v5 = vpop.trf.xlu0 }
 0x3be   : > { %1982 = vst.msk [vmem:[%s2997_s26 + $0x3c8] sm:$0xff] %vm1022_vm1, %v1306_v3  ;;  %1967 = vst.msk [vmem:[%s2997_s26 + $0x350] sm:$0xff] %vm1022_vm1, %v1275_v5 }
 0x3c1   : > { %v1307_v51 = vpop.trf.xlu1  ;;  %v1276_v6 = vpop.trf.xlu0 }
 0x3c2   : > { %1983 = vst.msk [vmem:[%s2997_s26 + $0x3d0] sm:$0xff] %vm1022_vm1, %v1307_v51  ;;  %1968 = vst.msk [vmem:[%s2997_s26 + $0x358] sm:$0xff] %vm1022_vm1, %v1276_v6 }
 0x3c5   : > { %v1308_v7 = vpop.trf.xlu1  ;;  %v1277_v0 = vpop.trf.xlu0 }
 0x3c6   : > { %1984 = vst.msk [vmem:[%s2997_s26 + $0x3d8] sm:$0xff] %vm1022_vm1, %v1308_v7  ;;  %1969 = vst.msk [vmem:[%s2997_s26 + $0x360] sm:$0xff] %vm1022_vm1, %v1277_v0 }
 0x3c9   : > { %v1309_v14 = vpop.trf.xlu1  ;;  %v1278_v8 = vpop.trf.xlu0 }
 0x3ca   : > { %1985 = vst.msk [vmem:[%s2997_s26 + $0x3e0] sm:$0xff] %vm1022_vm1, %v1309_v14  ;;  %1970 = vst.msk [vmem:[%s2997_s26 + $0x368] sm:$0xff] %vm1022_vm1, %v1278_v8 }
 0x3cd   : > { %v1310_v9 = vpop.trf.xlu1  ;;  %v1279_v10 = vpop.trf.xlu0  ;;  %1540 = vxpose.xlu0.b32.start.end [1/1] (short) %v954_v17, 128 }
 0x3ce   : > { %1986 = vst.msk [vmem:[%s2997_s26 + $0x3e8] sm:$0xff] %vm1022_vm1, %v1310_v9  ;;  %1971 = vst.msk [vmem:[%s2997_s26 + $0x370] sm:$0xff] %vm1022_vm1, %v1279_v10 }
 0x3d1   : > { %v1311_v12 = vpop.trf.xlu1  ;;  %1572 = vxpose.xlu1.b32.start.end [1/1] (short) %v955_v11, 128  ;;  %v1280_v46 = vpop.trf.xlu0 }
 0x3d2   : > { %1987 = vst.msk [vmem:[%s2997_s26 + $0x3f0] sm:$0xff] %vm1022_vm1, %v1311_v12  ;;  %1972 = vst.msk [vmem:[%s2997_s26 + $0x378] sm:$0xff] %vm1022_vm1, %v1280_v46 }
 0x3d5   : > { %v1312_v40 = vpop.trf.xlu1  ;;  %v1362_v13 = vpop.trf.xlu0 }
 0x3d6   : > { %1988 = vst.msk [vmem:[%s2997_s26 + $0x3f8] sm:$0xff] %vm1022_vm1, %v1312_v40  ;;  %1989 = vst.msk [vmem:[%s2997_s26 + $0x400] sm:$0xff] %vm1022_vm1, %v1362_v13 }
 0x3d9   : > { %v1394_v53 = vpop.trf.xlu1  ;;  %v1363_v45 = vpop.trf.xlu0 }
 0x3da   : > { %2005 = vst.msk [vmem:[%s2997_s26 + $0x480] sm:$0xff] %vm1022_vm1, %v1394_v53  ;;  %1990 = vst.msk [vmem:[%s2997_s26 + $0x408] sm:$0xff] %vm1022_vm1, %v1363_v45 }
 0x3dd   : > { %v1395_v48 = vpop.trf.xlu1  ;;  %v1364_v15 = vpop.trf.xlu0 }
 0x3de   : > { %2006 = vst.msk [vmem:[%s2997_s26 + $0x488] sm:$0xff] %vm1022_vm1, %v1395_v48  ;;  %1991 = vst.msk [vmem:[%s2997_s26 + $0x410] sm:$0xff] %vm1022_vm1, %v1364_v15 }
 0x3e1   : > { %v1396_v16 = vpop.trf.xlu1  ;;  %v1365_v18 = vpop.trf.xlu0 }
 0x3e2   : > { %2007 = vst.msk [vmem:[%s2997_s26 + $0x490] sm:$0xff] %vm1022_vm1, %v1396_v16  ;;  %1992 = vst.msk [vmem:[%s2997_s26 + $0x418] sm:$0xff] %vm1022_vm1, %v1365_v18 }
 0x3e5   : > { %v1397_v19 = vpop.trf.xlu1  ;;  %v1366_v20 = vpop.trf.xlu0 }
 0x3e6   : > { %2008 = vst.msk [vmem:[%s2997_s26 + $0x498] sm:$0xff] %vm1022_vm1, %v1397_v19  ;;  %1993 = vst.msk [vmem:[%s2997_s26 + $0x420] sm:$0xff] %vm1022_vm1, %v1366_v20 }
 0x3e9   : > { %v1398_v21 = vpop.trf.xlu1  ;;  %v1367_v22 = vpop.trf.xlu0 }
 0x3ea   : > { %2009 = vst.msk [vmem:[%s2997_s26 + $0x4a0] sm:$0xff] %vm1022_vm1, %v1398_v21  ;;  %1994 = vst.msk [vmem:[%s2997_s26 + $0x428] sm:$0xff] %vm1022_vm1, %v1367_v22 }
 0x3ed   : > { %v1399_v23 = vpop.trf.xlu1  ;;  %v1368_v24 = vpop.trf.xlu0 }
 0x3ee   : > { %2010 = vst.msk [vmem:[%s2997_s26 + $0x4a8] sm:$0xff] %vm1022_vm1, %v1399_v23  ;;  %1995 = vst.msk [vmem:[%s2997_s26 + $0x430] sm:$0xff] %vm1022_vm1, %v1368_v24 }
 0x3f1   : > { %v1400_v25 = vpop.trf.xlu1  ;;  %v1369_v27 = vpop.trf.xlu0 }
 0x3f2   : > { %2011 = vst.msk [vmem:[%s2997_s26 + $0x4b0] sm:$0xff] %vm1022_vm1, %v1400_v25  ;;  %1996 = vst.msk [vmem:[%s2997_s26 + $0x438] sm:$0xff] %vm1022_vm1, %v1369_v27 }
 0x3f5   : > { %v1401_v58 = vpop.trf.xlu1  ;;  %v1370_v28 = vpop.trf.xlu0 }
 0x3f6   : > { %2012 = vst.msk [vmem:[%s2997_s26 + $0x4b8] sm:$0xff] %vm1022_vm1, %v1401_v58  ;;  %1997 = vst.msk [vmem:[%s2997_s26 + $0x440] sm:$0xff] %vm1022_vm1, %v1370_v28 }
 0x3f9   : > { %v1402_v63 = vpop.trf.xlu1  ;;  %v1371_v29 = vpop.trf.xlu0 }
 0x3fa   : > { %2013 = vst.msk [vmem:[%s2997_s26 + $0x4c0] sm:$0xff] %vm1022_vm1, %v1402_v63  ;;  %1998 = vst.msk [vmem:[%s2997_s26 + $0x448] sm:$0xff] %vm1022_vm1, %v1371_v29 }
 0x3fd   : > { %v1403_v30 = vpop.trf.xlu1  ;;  %v1372_v32 = vpop.trf.xlu0 }
 0x3fe   : > { %2014 = vst.msk [vmem:[%s2997_s26 + $0x4c8] sm:$0xff] %vm1022_vm1, %v1403_v30  ;;  %1999 = vst.msk [vmem:[%s2997_s26 + $0x450] sm:$0xff] %vm1022_vm1, %v1372_v32 }
 0x401   : > { %v1404_v33 = vpop.trf.xlu1  ;;  %v1373_v34 = vpop.trf.xlu0 }
 0x402   : > { %2015 = vst.msk [vmem:[%s2997_s26 + $0x4d0] sm:$0xff] %vm1022_vm1, %v1404_v33  ;;  %2000 = vst.msk [vmem:[%s2997_s26 + $0x458] sm:$0xff] %vm1022_vm1, %v1373_v34 }
 0x405   : > { %v1405_v35 = vpop.trf.xlu1  ;;  %v1374_v36 = vpop.trf.xlu0 }
 0x406   : > { %2016 = vst.msk [vmem:[%s2997_s26 + $0x4d8] sm:$0xff] %vm1022_vm1, %v1405_v35  ;;  %2001 = vst.msk [vmem:[%s2997_s26 + $0x460] sm:$0xff] %vm1022_vm1, %v1374_v36 }
 0x409   : > { %v1406_v37 = vpop.trf.xlu1  ;;  %v1375_v38 = vpop.trf.xlu0 }
 0x40a   : > { %2017 = vst.msk [vmem:[%s2997_s26 + $0x4e0] sm:$0xff] %vm1022_vm1, %v1406_v37  ;;  %2002 = vst.msk [vmem:[%s2997_s26 + $0x468] sm:$0xff] %vm1022_vm1, %v1375_v38 }
 0x40d   : > { %v1407_v39 = vpop.trf.xlu1  ;;  %v1376_v31 = vpop.trf.xlu0  ;;  %1637 = vxpose.xlu0.b32.start.end [1/1] (short) %v956_v26, 128 }
 0x40e   : > { %2018 = vst.msk [vmem:[%s2997_s26 + $0x4e8] sm:$0xff] %vm1022_vm1, %v1407_v39  ;;  %2003 = vst.msk [vmem:[%s2997_s26 + $0x470] sm:$0xff] %vm1022_vm1, %v1376_v31 }
 0x411   : > { %v1408_v44 = vpop.trf.xlu1  ;;  %1669 = vxpose.xlu1.b32.start.end [1/1] (short) %v957_v41, 128  ;;  %v1377_v47 = vpop.trf.xlu0 }
 0x412   : > { %2019 = vst.msk [vmem:[%s2997_s26 + $0x4f0] sm:$0xff] %vm1022_vm1, %v1408_v44  ;;  %2004 = vst.msk [vmem:[%s2997_s26 + $0x478] sm:$0xff] %vm1022_vm1, %v1377_v47 }
 0x415   : > { %v1409_v61 = vpop.trf.xlu1  ;;  %v1459_v49 = vpop.trf.xlu0 }
 0x416   : > { %2020 = vst.msk [vmem:[%s2997_s26 + $0x4f8] sm:$0xff] %vm1022_vm1, %v1409_v61  ;;  %2021 = vst.msk [vmem:[%s2997_s26 + $0x500] sm:$0xff] %vm1022_vm1, %v1459_v49 }
 0x419   : > { %v1491_v62 = vpop.trf.xlu1  ;;  %v1460_v54 = vpop.trf.xlu0 }
 0x41a   : > { %2037 = vst.msk [vmem:[%s2997_s26 + $0x580] sm:$0xff] %vm1022_vm1, %v1491_v62  ;;  %2022 = vst.msk [vmem:[%s2997_s26 + $0x508] sm:$0xff] %vm1022_vm1, %v1460_v54 }
 0x41d   : > { %v1492_v55 = vpop.trf.xlu1  ;;  %v1461_v56 = vpop.trf.xlu0 }
 0x41e   : > { %2038 = vst.msk [vmem:[%s2997_s26 + $0x588] sm:$0xff] %vm1022_vm1, %v1492_v55  ;;  %2023 = vst.msk [vmem:[%s2997_s26 + $0x510] sm:$0xff] %vm1022_vm1, %v1461_v56 }
 0x421   : > { %v1493_v57 = vpop.trf.xlu1  ;;  %v1462_v59 = vpop.trf.xlu0 }
 0x422   : > { %2039 = vst.msk [vmem:[%s2997_s26 + $0x590] sm:$0xff] %vm1022_vm1, %v1493_v57  ;;  %2024 = vst.msk [vmem:[%s2997_s26 + $0x518] sm:$0xff] %vm1022_vm1, %v1462_v59 }
 0x425   : > { %v1494_v60 = vpop.trf.xlu1  ;;  %v1463_v1 = vpop.trf.xlu0 }
 0x426   : > { %2040 = vst.msk [vmem:[%s2997_s26 + $0x598] sm:$0xff] %vm1022_vm1, %v1494_v60  ;;  %2025 = vst.msk [vmem:[%s2997_s26 + $0x520] sm:$0xff] %vm1022_vm1, %v1463_v1 }
 0x429   : > { %v1495_v4 = vpop.trf.xlu1  ;;  %v1464_v52 = vpop.trf.xlu0 }
 0x42a   : > { %2041 = vst.msk [vmem:[%s2997_s26 + $0x5a0] sm:$0xff] %vm1022_vm1, %v1495_v4  ;;  %2026 = vst.msk [vmem:[%s2997_s26 + $0x528] sm:$0xff] %vm1022_vm1, %v1464_v52 }
 0x42d   : > { %v1496_v50 = vpop.trf.xlu1  ;;  %v1465_v42 = vpop.trf.xlu0 }
 0x42e   : > { %2042 = vst.msk [vmem:[%s2997_s26 + $0x5a8] sm:$0xff] %vm1022_vm1, %v1496_v50  ;;  %2027 = vst.msk [vmem:[%s2997_s26 + $0x530] sm:$0xff] %vm1022_vm1, %v1465_v42 }
 0x431   : > { %v1497_v43 = vpop.trf.xlu1  ;;  %v1466_v2 = vpop.trf.xlu0 }
 0x432   : > { %2043 = vst.msk [vmem:[%s2997_s26 + $0x5b0] sm:$0xff] %vm1022_vm1, %v1497_v43  ;;  %2028 = vst.msk [vmem:[%s2997_s26 + $0x538] sm:$0xff] %vm1022_vm1, %v1466_v2 }
 0x435   : > { %v1498_v3 = vpop.trf.xlu1  ;;  %v1467_v5 = vpop.trf.xlu0 }
 0x436   : > { %2044 = vst.msk [vmem:[%s2997_s26 + $0x5b8] sm:$0xff] %vm1022_vm1, %v1498_v3  ;;  %2029 = vst.msk [vmem:[%s2997_s26 + $0x540] sm:$0xff] %vm1022_vm1, %v1467_v5 }
 0x439   : > { %v1499_v51 = vpop.trf.xlu1  ;;  %v1468_v6 = vpop.trf.xlu0 }
 0x43a   : > { %2045 = vst.msk [vmem:[%s2997_s26 + $0x5c0] sm:$0xff] %vm1022_vm1, %v1499_v51  ;;  %2030 = vst.msk [vmem:[%s2997_s26 + $0x548] sm:$0xff] %vm1022_vm1, %v1468_v6 }
 0x43d   : > { %v1500_v7 = vpop.trf.xlu1  ;;  %v1469_v0 = vpop.trf.xlu0 }
 0x43e   : > { %2046 = vst.msk [vmem:[%s2997_s26 + $0x5c8] sm:$0xff] %vm1022_vm1, %v1500_v7  ;;  %2031 = vst.msk [vmem:[%s2997_s26 + $0x550] sm:$0xff] %vm1022_vm1, %v1469_v0 }
 0x441   : > { %v1501_v14 = vpop.trf.xlu1  ;;  %v1470_v8 = vpop.trf.xlu0 }
 0x442   : > { %2047 = vst.msk [vmem:[%s2997_s26 + $0x5d0] sm:$0xff] %vm1022_vm1, %v1501_v14  ;;  %2032 = vst.msk [vmem:[%s2997_s26 + $0x558] sm:$0xff] %vm1022_vm1, %v1470_v8 }
 0x445   : > { %v1502_v17 = vpop.trf.xlu1  ;;  %v1471_v9 = vpop.trf.xlu0 }
 0x446   : > { %2048 = vst.msk [vmem:[%s2997_s26 + $0x5d8] sm:$0xff] %vm1022_vm1, %v1502_v17  ;;  %2033 = vst.msk [vmem:[%s2997_s26 + $0x560] sm:$0xff] %vm1022_vm1, %v1471_v9 }
 0x449   : > { %v1503_v10 = vpop.trf.xlu1  ;;  %v1472_v11 = vpop.trf.xlu0 }
 0x44a   : > { %2049 = vst.msk [vmem:[%s2997_s26 + $0x5e0] sm:$0xff] %vm1022_vm1, %v1503_v10  ;;  %2034 = vst.msk [vmem:[%s2997_s26 + $0x568] sm:$0xff] %vm1022_vm1, %v1472_v11 }
 0x44d   : > { %v1504_v12 = vpop.trf.xlu1  ;;  %v1473_v46 = vpop.trf.xlu0 }
 0x44e   : > { %2050 = vst.msk [vmem:[%s2997_s26 + $0x5e8] sm:$0xff] %vm1022_vm1, %v1504_v12  ;;  %2035 = vst.msk [vmem:[%s2997_s26 + $0x570] sm:$0xff] %vm1022_vm1, %v1473_v46 }
 0x451   : > { %v1505_v40 = vpop.trf.xlu1  ;;  %v1474_v13 = vpop.trf.xlu0 }
 0x452   : > { %2051 = vst.msk [vmem:[%s2997_s26 + $0x5f0] sm:$0xff] %vm1022_vm1, %v1505_v40  ;;  %2036 = vst.msk [vmem:[%s2997_s26 + $0x578] sm:$0xff] %vm1022_vm1, %v1474_v13 }
 0x455   : > { %v1506_v53 = vpop.trf.xlu1  ;;  %v1556_v45 = vpop.trf.xlu0 }
 0x456   : > { %2052 = vst.msk [vmem:[%s2997_s26 + $0x5f8] sm:$0xff] %vm1022_vm1, %v1506_v53  ;;  %2053 = vst.msk [vmem:[%s2997_s26 + $0x600] sm:$0xff] %vm1022_vm1, %v1556_v45 }
 0x459   : > { %v1588_v48 = vpop.trf.xlu1  ;;  %v1557_v15 = vpop.trf.xlu0 }
 0x45a   : > { %2069 = vst.msk [vmem:[%s2997_s26 + $0x680] sm:$0xff] %vm1022_vm1, %v1588_v48  ;;  %2054 = vst.msk [vmem:[%s2997_s26 + $0x608] sm:$0xff] %vm1022_vm1, %v1557_v15 }
 0x45d   : > { %v1589_v16 = vpop.trf.xlu1  ;;  %v1558_v18 = vpop.trf.xlu0 }
 0x45e   : > { %2070 = vst.msk [vmem:[%s2997_s26 + $0x688] sm:$0xff] %vm1022_vm1, %v1589_v16  ;;  %2055 = vst.msk [vmem:[%s2997_s26 + $0x610] sm:$0xff] %vm1022_vm1, %v1558_v18 }
 0x461   : > { %v1590_v19 = vpop.trf.xlu1  ;;  %v1559_v20 = vpop.trf.xlu0 }
 0x462   : > { %2071 = vst.msk [vmem:[%s2997_s26 + $0x690] sm:$0xff] %vm1022_vm1, %v1590_v19  ;;  %2056 = vst.msk [vmem:[%s2997_s26 + $0x618] sm:$0xff] %vm1022_vm1, %v1559_v20 }
 0x465   : > { %v1591_v21 = vpop.trf.xlu1  ;;  %v1560_v22 = vpop.trf.xlu0 }
 0x466   : > { %2072 = vst.msk [vmem:[%s2997_s26 + $0x698] sm:$0xff] %vm1022_vm1, %v1591_v21  ;;  %2057 = vst.msk [vmem:[%s2997_s26 + $0x620] sm:$0xff] %vm1022_vm1, %v1560_v22 }
 0x469   : > { %v1592_v23 = vpop.trf.xlu1  ;;  %v1561_v24 = vpop.trf.xlu0 }
 0x46a   : > { %2073 = vst.msk [vmem:[%s2997_s26 + $0x6a0] sm:$0xff] %vm1022_vm1, %v1592_v23  ;;  %2058 = vst.msk [vmem:[%s2997_s26 + $0x628] sm:$0xff] %vm1022_vm1, %v1561_v24 }
 0x46d   : > { %v1593_v25 = vpop.trf.xlu1  ;;  %v1562_v27 = vpop.trf.xlu0 }
 0x46e   : > { %2074 = vst.msk [vmem:[%s2997_s26 + $0x6a8] sm:$0xff] %vm1022_vm1, %v1593_v25  ;;  %2059 = vst.msk [vmem:[%s2997_s26 + $0x630] sm:$0xff] %vm1022_vm1, %v1562_v27 }
 0x471   : > { %v1594_v58 = vpop.trf.xlu1  ;;  %v1563_v28 = vpop.trf.xlu0 }
 0x472   : > { %2075 = vst.msk [vmem:[%s2997_s26 + $0x6b0] sm:$0xff] %vm1022_vm1, %v1594_v58  ;;  %2060 = vst.msk [vmem:[%s2997_s26 + $0x638] sm:$0xff] %vm1022_vm1, %v1563_v28 }
 0x475   : > { %v1595_v63 = vpop.trf.xlu1  ;;  %v1564_v29 = vpop.trf.xlu0 }
 0x476   : > { %2076 = vst.msk [vmem:[%s2997_s26 + $0x6b8] sm:$0xff] %vm1022_vm1, %v1595_v63  ;;  %2061 = vst.msk [vmem:[%s2997_s26 + $0x640] sm:$0xff] %vm1022_vm1, %v1564_v29 }
 0x479   : > { %v1596_v30 = vpop.trf.xlu1  ;;  %v1565_v32 = vpop.trf.xlu0 }
 0x47a   : > { %2077 = vst.msk [vmem:[%s2997_s26 + $0x6c0] sm:$0xff] %vm1022_vm1, %v1596_v30  ;;  %2062 = vst.msk [vmem:[%s2997_s26 + $0x648] sm:$0xff] %vm1022_vm1, %v1565_v32 }
 0x47d   : > { %v1597_v33 = vpop.trf.xlu1  ;;  %v1566_v34 = vpop.trf.xlu0 }
 0x47e   : > { %2078 = vst.msk [vmem:[%s2997_s26 + $0x6c8] sm:$0xff] %vm1022_vm1, %v1597_v33  ;;  %2063 = vst.msk [vmem:[%s2997_s26 + $0x650] sm:$0xff] %vm1022_vm1, %v1566_v34 }
 0x481   : > { %v1598_v35 = vpop.trf.xlu1  ;;  %v1567_v36 = vpop.trf.xlu0 }
 0x482   : > { %2079 = vst.msk [vmem:[%s2997_s26 + $0x6d0] sm:$0xff] %vm1022_vm1, %v1598_v35  ;;  %2064 = vst.msk [vmem:[%s2997_s26 + $0x658] sm:$0xff] %vm1022_vm1, %v1567_v36 }
 0x485   : > { %v1599_v37 = vpop.trf.xlu1  ;;  %v1568_v38 = vpop.trf.xlu0 }
 0x486   : > { %2080 = vst.msk [vmem:[%s2997_s26 + $0x6d8] sm:$0xff] %vm1022_vm1, %v1599_v37  ;;  %2065 = vst.msk [vmem:[%s2997_s26 + $0x660] sm:$0xff] %vm1022_vm1, %v1568_v38 }
 0x489   : > { %v1600_v26 = vpop.trf.xlu1  ;;  %v1569_v39 = vpop.trf.xlu0 }
 0x48a   : > { %2081 = vst.msk [vmem:[%s2997_s26 + $0x6e0] sm:$0xff] %vm1022_vm1, %v1600_v26  ;;  %2066 = vst.msk [vmem:[%s2997_s26 + $0x668] sm:$0xff] %vm1022_vm1, %v1569_v39 }
 0x48d   : > { %v1601_v31 = vpop.trf.xlu1  ;;  %v1570_v41 = vpop.trf.xlu0 }
 0x48e   : > { %2082 = vst.msk [vmem:[%s2997_s26 + $0x6e8] sm:$0xff] %vm1022_vm1, %v1601_v31  ;;  %2067 = vst.msk [vmem:[%s2997_s26 + $0x670] sm:$0xff] %vm1022_vm1, %v1570_v41 }
 0x491   : > { %v1602_v44 = vpop.trf.xlu1  ;;  %v1571_v47 = vpop.trf.xlu0 }
 0x492   : > { %2083 = vst.msk [vmem:[%s2997_s26 + $0x6f0] sm:$0xff] %vm1022_vm1, %v1602_v44  ;;  %2068 = vst.msk [vmem:[%s2997_s26 + $0x678] sm:$0xff] %vm1022_vm1, %v1571_v47 }
 0x495   : > { %v1603_v61 = vpop.trf.xlu1  ;;  %v1653_v49 = vpop.trf.xlu0 }
 0x496   : > { %2084 = vst.msk [vmem:[%s2997_s26 + $0x6f8] sm:$0xff] %vm1022_vm1, %v1603_v61  ;;  %2085 = vst.msk [vmem:[%s2997_s26 + $0x700] sm:$0xff] %vm1022_vm1, %v1653_v49 }
 0x499   : > { %v1685_v62 = vpop.trf.xlu1  ;;  %v1654_v54 = vpop.trf.xlu0 }
 0x49a   : > { %2101 = vst.msk [vmem:[%s2997_s26 + $0x780] sm:$0xff] %vm1022_vm1, %v1685_v62  ;;  %2086 = vst.msk [vmem:[%s2997_s26 + $0x708] sm:$0xff] %vm1022_vm1, %v1654_v54 }
 0x49d   : > { %v1686_v55 = vpop.trf.xlu1  ;;  %v1655_v56 = vpop.trf.xlu0 }
 0x49e   : > { %2102 = vst.msk [vmem:[%s2997_s26 + $0x788] sm:$0xff] %vm1022_vm1, %v1686_v55  ;;  %2087 = vst.msk [vmem:[%s2997_s26 + $0x710] sm:$0xff] %vm1022_vm1, %v1655_v56 }
 0x4a1   : > { %v1687_v57 = vpop.trf.xlu1  ;;  %v1656_v59 = vpop.trf.xlu0 }
 0x4a2   : > { %2103 = vst.msk [vmem:[%s2997_s26 + $0x790] sm:$0xff] %vm1022_vm1, %v1687_v57  ;;  %2088 = vst.msk [vmem:[%s2997_s26 + $0x718] sm:$0xff] %vm1022_vm1, %v1656_v59 }
 0x4a5   : > { %v1688_v60 = vpop.trf.xlu1  ;;  %v1657_v1 = vpop.trf.xlu0 }
 0x4a6   : > { %2104 = vst.msk [vmem:[%s2997_s26 + $0x798] sm:$0xff] %vm1022_vm1, %v1688_v60  ;;  %2089 = vst.msk [vmem:[%s2997_s26 + $0x720] sm:$0xff] %vm1022_vm1, %v1657_v1 }
 0x4a9   : > { %v1689_v4 = vpop.trf.xlu1  ;;  %v1658_v52 = vpop.trf.xlu0 }
 0x4aa   : > { %2105 = vst.msk [vmem:[%s2997_s26 + $0x7a0] sm:$0xff] %vm1022_vm1, %v1689_v4  ;;  %2090 = vst.msk [vmem:[%s2997_s26 + $0x728] sm:$0xff] %vm1022_vm1, %v1658_v52 }
 0x4ad   : > { %v1690_v50 = vpop.trf.xlu1  ;;  %v1659_v42 = vpop.trf.xlu0 }
 0x4ae   : > { %2106 = vst.msk [vmem:[%s2997_s26 + $0x7a8] sm:$0xff] %vm1022_vm1, %v1690_v50  ;;  %2091 = vst.msk [vmem:[%s2997_s26 + $0x730] sm:$0xff] %vm1022_vm1, %v1659_v42 }
 0x4b1   : > { %v1691_v43 = vpop.trf.xlu1  ;;  %v1660_v2 = vpop.trf.xlu0 }
 0x4b2   : > { %2107 = vst.msk [vmem:[%s2997_s26 + $0x7b0] sm:$0xff] %vm1022_vm1, %v1691_v43  ;;  %2092 = vst.msk [vmem:[%s2997_s26 + $0x738] sm:$0xff] %vm1022_vm1, %v1660_v2 }
 0x4b5   : > { %v1692_v3 = vpop.trf.xlu1  ;;  %v1661_v5 = vpop.trf.xlu0 }
 0x4b6   : > { %2108 = vst.msk [vmem:[%s2997_s26 + $0x7b8] sm:$0xff] %vm1022_vm1, %v1692_v3  ;;  %2093 = vst.msk [vmem:[%s2997_s26 + $0x740] sm:$0xff] %vm1022_vm1, %v1661_v5 }
 0x4b9   : > { %v1693_v51 = vpop.trf.xlu1  ;;  %v1662_v6 = vpop.trf.xlu0 }
 0x4ba   : > { %2109 = vst.msk [vmem:[%s2997_s26 + $0x7c0] sm:$0xff] %vm1022_vm1, %v1693_v51  ;;  %2094 = vst.msk [vmem:[%s2997_s26 + $0x748] sm:$0xff] %vm1022_vm1, %v1662_v6 }
 0x4bd   : > { %v1694_v7 = vpop.trf.xlu1  ;;  %v1663_v0 = vpop.trf.xlu0 }
 0x4be   : > { %2110 = vst.msk [vmem:[%s2997_s26 + $0x7c8] sm:$0xff] %vm1022_vm1, %v1694_v7  ;;  %2095 = vst.msk [vmem:[%s2997_s26 + $0x750] sm:$0xff] %vm1022_vm1, %v1663_v0 }
 0x4c1   : > { %v1695_v14 = vpop.trf.xlu1  ;;  %v1664_v8 = vpop.trf.xlu0 }
 0x4c2   : > { %2111 = vst.msk [vmem:[%s2997_s26 + $0x7d0] sm:$0xff] %vm1022_vm1, %v1695_v14  ;;  %2096 = vst.msk [vmem:[%s2997_s26 + $0x758] sm:$0xff] %vm1022_vm1, %v1664_v8 }
 0x4c5   : > { %v1696_v17 = vpop.trf.xlu1  ;;  %v1665_v9 = vpop.trf.xlu0 }
 0x4c6   : > { %2112 = vst.msk [vmem:[%s2997_s26 + $0x7d8] sm:$0xff] %vm1022_vm1, %v1696_v17  ;;  %2097 = vst.msk [vmem:[%s2997_s26 + $0x760] sm:$0xff] %vm1022_vm1, %v1665_v9 }
 0x4c9   : > { %v1697_v10 = vpop.trf.xlu1  ;;  %v1666_v11 = vpop.trf.xlu0 }
 0x4ca   : > { %2113 = vst.msk [vmem:[%s2997_s26 + $0x7e0] sm:$0xff] %vm1022_vm1, %v1697_v10  ;;  %2098 = vst.msk [vmem:[%s2997_s26 + $0x768] sm:$0xff] %vm1022_vm1, %v1666_v11 }
 0x4cd   : > { %v1698_v12 = vpop.trf.xlu1  ;;  %v1667_v46 = vpop.trf.xlu0 }
 0x4ce   : > { %2114 = vst.msk [vmem:[%s2997_s26 + $0x7e8] sm:$0xff] %vm1022_vm1, %v1698_v12  ;;  %2099 = vst.msk [vmem:[%s2997_s26 + $0x770] sm:$0xff] %vm1022_vm1, %v1667_v46 }
 0x4d1   : > { %v1699_v40 = vpop.trf.xlu1  ;;  %v1668_v13 = vpop.trf.xlu0 }
 0x4d2   : > { %2115 = vst.msk [vmem:[%s2997_s26 + $0x7f0] sm:$0xff] %vm1022_vm1, %v1699_v40  ;;  %2100 = vst.msk [vmem:[%s2997_s26 + $0x778] sm:$0xff] %vm1022_vm1, %v1668_v13 }
 0x4d5   : > { %v1700_v53 = vpop.trf.xlu1 }
 0x4d6   : > { %2116 = vst.msk [vmem:[%s2997_s26 + $0x7f8] sm:$0xff] %vm1022_vm1, %v1700_v53 }
 0x4d7   : > { %2526 = shalt.err (!%p2523_p13)
}
 0x4d8   : > { %s2527_s12 = scalar_lea.hbm %s3524_s16, 32768  ;;  %s2531_s17 = scalar_lea.hbm %s3577_s5, 65536 }
 0x4d9   : > { %p2528_p0 = scmp.ne.s32.totalorder %s3524_s16, %s2527_s12  ;;  %p2532_p9 = scmp.lt.u32.totalorder %s3524_s16, %s3577_s5 }
 0x4da   : > { %p2533_p12 = scmp.lt.u32.totalorder %s2531_s17, %s2527_s12  ;;  %p2535_p4 = scmp.lt.u32.totalorder %s2527_s12, %s3524_s16 }
 0x4db   : > { %p2529_p5 = pnand %p2528_p0, %p2789_p1 }
 0x4dc   : > { %p2534_p2 = por %p2533_p12, %p2532_p9 }
 0x4dd   : > { %p2530_p11 = pneg %p2529_p5 }
 0x4de   : > { %p2536_p6 = por %p2535_p4, %p2534_p2 }
 0x4e0   : > { %p2537_p8 = pnand %p2536_p6, %p2530_p11 }
 0x4e2   : > { %2540 = shalt.err (!%p2537_p8)
}
 0x4e3   : > { %s2600_s7 = smov 128   ;;  %s2601_s11 = smov 8  }
 0x4e4   : > { %2295 = dma.vmem_to_hbm [thread:$0]  (%p2789_p1), %s3526_s10, 32768, %s3524_s16, %s1735_s22, %s2600_s7, %s2600_s7, %s2601_s11  }
 0x4e5 PF: > { %s1764_s8 = sand.u32 1, %s2575_s18   ;;  %p3595_p3 = scmp.ne.s32.totalorder %s3582_s25, 0 }
 0x4e6   : > { %p3596_p7 = scmp.ge.s32.totalorder %s2587_s21, 2  ;;  %s1765_s27 = scalar_lea.sflag [#allocation4], %s1764_s8 }
 0x4e8   : > { %p2315_p10 = pnand %p3596_p7, %p3595_p3 }
 0x4ea   : > { %2570 = dma.done.wait (!%p2315_p10), %s1765_s27, 32768  }
 0x4eb   : > { %2572 = vsyncadd (!%p2315_p10), %s1765_s27, 4294934528  ;;  %p20_p13 = scmp.ge.s32.totalorder %s2779_s14, 4   ;;  %s3597_s18 = smov %s2579_s19 }
 0x4ec   : > { %s3598_s19 = smov %s2583_s20  ;;  %s3599_s20 = smov %s2795_s15 }
 0x4ed   : > { %s3600_s21 = smov %s2779_s14  ;;  %22 = sbr.rel (!%p20_p13) target bundleno = 7 (0x7), region = 108 }
 0x4f4   :  { %1770 = vsyncpa [#allocation3], 1 }
 0x4f5   :  { %1772 = vsyncpa [#allocation3 + $0x1], 1 }
 0x4f6   :  { %1773 = vsyncpa [#allocation6], 1 }
 0x4f7   :  { %1774 = vsyncpa [#allocation9], 1 }
 0x4f8   :  { %1775 = vsyncpa [#allocation4], 1 }
 0x4f9   :  { %1777 = vsyncpa [#allocation4 + $0x1], 1 }

</bundles_post_ra>
